<compile_context>
chip_gen: v7x
topology: tpu7x:2x2x1
jax: 0.10.0
libtpu: 0.0.40
codegen_flags: <defaults>
</compile_context>

<pallas_src>
import jax
import jax.numpy as jnp
from jax.experimental import pallas as pl
from jax.experimental.pallas import tpu as pltpu

EPS = 1e-5                     # PyTorch BatchNorm2d default
MATMUL_DTYPE = jnp.bfloat16    # MXU operand dtype (f32 accumulation).
                               # Set to jnp.float32 for bit-closer numerics.
LANES = 128


def _round_up(x, m):
    return (x + m - 1) // m * m


# ----------------------------- Pallas kernel --------------------------------
def _make_block_kernel(N, Ho, Wo, Cin, Cpad, stride, has_proj):
    """Whole residual Block in one kernel (grid=(1,), full-array blocks)."""
    M = N * Ho * Wo
    CW = 2 * Cpad if has_proj else Cpad   # conv1 (+ projection) output width

    def bn_affine(acc, gamma_row, beta_row):
        # Training-mode BatchNorm2d: per-channel batch stats over all M rows,
        # biased variance, folded into a single per-channel scale/shift.
        mean = jnp.mean(acc, axis=0, keepdims=True)
        cent = acc - mean
        var = jnp.mean(cent * cent, axis=0, keepdims=True)
        scale = gamma_row * jax.lax.rsqrt(var + EPS)
        return acc * scale + (beta_row - mean * scale)

    def kernel(*refs):
        if has_proj:
            xph_ref, w1_ref, w2_ref, bn_ref, o_ref, y1p_ref = refs
            res_ref = None
        else:
            xph_ref, w1_ref, w2_ref, res_ref, bn_ref, o_ref, y1p_ref = refs

        f32 = jnp.float32
        bn_p = bn_ref[...]                              # (rows, Cpad)

        # ---- conv1 (+ projection conv): 9 accumulated MXU matmuls ----------
        # conv1 and the shortcut conv share their LHS taps; their weights are
        # concatenated along the output axis, so one dot per tap covers both.
        acc_a = jnp.zeros((M, CW), f32)
        for kh in range(3):
            for kw in range(3):
                t = kh * 3 + kw
                p = (kh % stride) * stride + (kw % stride)   # stride phase
                qh, qw = kh // stride, kw // stride          # offset in phase
                tap = xph_ref[p * N:(p + 1) * N, qh:qh + Ho, qw:qw + Wo, :]
                lhs = tap.reshape(M, Cin).astype(MATMUL_DTYPE)
                acc_a = acc_a + jnp.dot(lhs, w1_ref[t],
                                        preferred_element_type=f32)

        y1 = jnp.maximum(bn_affine(acc_a[:, :Cpad], bn_p[0:1], bn_p[1:2]), 0.0)

        # ---- conv2 (3x3, stride 1, pad 1) on the VMEM-resident y1 ----------
        # y1 is placed at W-offset 8 inside a zeroed padded scratch so the
        # interior store is sublane-tile aligned; taps are unit-stride slices.
        y1p_ref[...] = jnp.zeros_like(y1p_ref)
        y1p_ref[:, 1:Ho + 1, 8:8 + Wo, :] = y1.reshape(N, Ho, Wo, Cpad)
        acc2 = jnp.zeros((M, Cpad), f32)
        for kh in range(3):
            for kw in range(3):
                t = kh * 3 + kw
                tap = y1p_ref[:, kh:kh + Ho, 7 + kw:7 + kw + Wo, :]
                lhs = tap.reshape(M, Cpad).astype(MATMUL_DTYPE)
                acc2 = acc2 + jnp.dot(lhs, w2_ref[t],
                                      preferred_element_type=f32)
        y2 = bn_affine(acc2, bn_p[2:3], bn_p[3:4])

        # ---- residual add + final ReLU --------------------------------------
        if has_proj:
            resid = bn_affine(acc_a[:, Cpad:], bn_p[4:5], bn_p[5:6])
        else:
            resid = res_ref[...]                        # identity shortcut
        o_ref[...] = jnp.maximum(y2 + resid, 0.0).astype(o_ref.dtype)

    return kernel


# ----------------------------- JAX glue --------------------------------------
def _conv_w_to_mat(w, cin_pad, cout_pad):
    """PyTorch (Cout, Cin, 3, 3) -> (9, cin_pad, cout_pad), tap-major."""
    cout, cin = w.shape[0], w.shape[1]
    m = jnp.transpose(w, (2, 3, 1, 0)).reshape(9, cin, cout)
    return jnp.pad(m, ((0, 0), (0, cin_pad - cin), (0, cout_pad - cout)))


def _stride_phases(x_nhwc, stride, Ho, Wo):
    """Zero-pad (pad=1) and split into stride x stride phases so every 3x3 tap
    of the strided conv is a unit-stride slice of one phase.
    Returns (stride^2 * N, A, B, Cin); total bytes == padded input (no im2col)."""
    N, H, W, C = x_nhwc.shape
    q = 2 // stride
    A = max(Ho + q, -(-(H + 2) // stride))
    B = max(Wo + q, -(-(W + 2) // stride))
    xp = jnp.pad(x_nhwc, ((0, 0), (1, stride * A - H - 1),
                          (1, stride * B - W - 1), (0, 0)))
    xph = xp.reshape(N, A, stride, B, stride, C)
    xph = jnp.transpose(xph, (2, 4, 0, 1, 3, 5))          # (sH, sW, N, A, B, C)
    return xph.reshape(stride * stride * N, A, B, C)


def _full_spec(shape):
    zeros = (0,) * len(shape)
    return pl.BlockSpec(shape, lambda i, _z=zeros: _z)


def block_forward(x_nchw, params, inchannel, outchannel, stride):
    """out = ReLU(BN2(Conv2(ReLU(BN1(Conv1(x))))) + shortcut(x)); NCHW in/out."""
    N, C, H, W = x_nchw.shape
    assert C == inchannel
    x = jnp.transpose(x_nchw, (0, 2, 3, 1)).astype(jnp.float32)   # NHWC

    Ho = (H - 1) // stride + 1          # 3x3, pad=1
    Wo = (W - 1) // stride + 1
    M = N * Ho * Wo
    Cpad = _round_up(outchannel, LANES)  # lane-dense output / matmul N dim
    has_proj = (inchannel != outchannel) or (stride != 1)

    xph = _stride_phases(x, stride, Ho, Wo)

    # Weights as tap-major matrices, output channels zero-padded to Cpad,
    # bf16 operands.  Conv biases are omitted: they are cancelled exactly by
    # the batch-statistics BatchNorm.
    w1m = _conv_w_to_mat(params["w1"], inchannel, Cpad)
    w2m = _conv_w_to_mat(params["w2"], Cpad, Cpad).astype(MATMUL_DTYPE)
    bn_rows = [params["g1"], params["be1"], params["g2"], params["be2"]]
    if has_proj:
        wsm = _conv_w_to_mat(params["ws"], inchannel, Cpad)
        w1m = jnp.concatenate([w1m, wsm], axis=-1)        # share LHS taps
        bn_rows += [params["gs"], params["bes"]]
    w1m = w1m.astype(MATMUL_DTYPE)
    bnp = jnp.stack([jnp.pad(r.astype(jnp.float32), (0, Cpad - outchannel))
                     for r in bn_rows])                   # one packed BN array

    inputs = [xph, w1m, w2m]
    in_specs = [_full_spec(xph.shape), _full_spec(w1m.shape),
                _full_spec(w2m.shape)]
    if not has_proj:
        res = jnp.pad(x, ((0, 0), (0, 0), (0, 0),
                          (0, Cpad - inchannel))).reshape(M, Cpad)
        inputs.append(res)
        in_specs.append(_full_spec(res.shape))
    inputs.append(bnp)
    in_specs.append(_full_spec(bnp.shape))

    out2d = pl.pallas_call(
        _make_block_kernel(N, Ho, Wo, inchannel, Cpad, stride, has_proj),
        out_shape=jax.ShapeDtypeStruct((M, Cpad), jnp.float32),
        grid_spec=pltpu.PrefetchScalarGridSpec(
            num_scalar_prefetch=0,
            grid=(1,),
            in_specs=in_specs,
            out_specs=pl.BlockSpec((M, Cpad), lambda i: (0, 0)),
            scratch_shapes=[pltpu.VMEM((N, Ho + 2, Wo + 9, Cpad), jnp.float32)],
        ),
        compiler_params=pltpu.CompilerParams(
            dimension_semantics=("arbitrary",),
            vmem_limit_bytes=32 * 1024 * 1024),
    )(*inputs)

    y = out2d.reshape(N, Ho, Wo, Cpad)[:, :, :, :outchannel]
    return jnp.transpose(y, (0, 3, 1, 2)).astype(x_nchw.dtype)   # NHWC -> NCHW


def init_block_params(key, inchannel, outchannel, stride):
    ks = jax.random.split(key, 9)

    def conv_w(k, cin, cout):
        return jax.random.normal(k, (cout, cin, 3, 3), jnp.float32) * 0.1

    # No conv biases: under batch-statistics BN they cancel exactly.
    p = {
        "w1": conv_w(ks[0], inchannel, outchannel),
        "g1": 1.0 + 0.1 * jax.random.normal(ks[1], (outchannel,), jnp.float32),
        "be1": 0.1 * jax.random.normal(ks[2], (outchannel,), jnp.float32),
        "w2": conv_w(ks[3], outchannel, outchannel),
        "g2": 1.0 + 0.1 * jax.random.normal(ks[4], (outchannel,), jnp.float32),
        "be2": 0.1 * jax.random.normal(ks[5], (outchannel,), jnp.float32),
    }
    if inchannel != outchannel or stride != 1:
        p.update({
            "ws": conv_w(ks[6], inchannel, outchannel),
            "gs": 1.0 + 0.1 * jax.random.normal(ks[7], (outchannel,), jnp.float32),
            "bes": 0.1 * jax.random.normal(ks[8], (outchannel,), jnp.float32),
        })
    return p


def block_forward_reference(x_nchw, params, inchannel, outchannel, stride):
    """Pure-XLA reference of the PyTorch training-mode forward (for checking)."""
    def conv_bn(x, w, g, b, s, relu):
        y = jax.lax.conv_general_dilated(
            x, w, window_strides=(s, s), padding=((1, 1), (1, 1)),
            dimension_numbers=("NCHW", "OIHW", "NCHW"),
            precision=jax.lax.Precision.HIGHEST)
        mean = jnp.mean(y, axis=(0, 2, 3), keepdims=True)
        var = jnp.mean((y - mean) ** 2, axis=(0, 2, 3), keepdims=True)
        y = (y - mean) * jax.lax.rsqrt(var + EPS)
        y = y * g.reshape(1, -1, 1, 1) + b.reshape(1, -1, 1, 1)
        return jnp.maximum(y, 0.0) if relu else y

    y = conv_bn(x_nchw, params["w1"], params["g1"], params["be1"], stride, True)
    y = conv_bn(y, params["w2"], params["g2"], params["be2"], 1, False)
    if inchannel != outchannel or stride != 1:
        sc = conv_bn(x_nchw, params["ws"], params["gs"], params["bes"],
                     stride, False)
    else:
        sc = x_nchw
    return jnp.maximum(y + sc, 0.0)


if __name__ == "__main__":
    inchannel, outchannel, stride = 4, 8, 2
    key = jax.random.PRNGKey(0)
    kx, kp = jax.random.split(key)
    x = jax.random.normal(kx, (2, inchannel, 16, 16), jnp.float32)   # NCHW
    params = init_block_params(kp, inchannel, outchannel, stride)

    out = block_forward(x, params, inchannel, outchannel, stride)
    out = jax.block_until_ready(out)
    assert out.shape == (2, outchannel, 8, 8), out.shape

    # Structural self-check vs the pure-XLA reference (tolerance accounts for
    # bf16 matmul operands with f32 accumulation).
    ref = block_forward_reference(x, params, inchannel, outchannel, stride)
    rel_err = float(jnp.max(jnp.abs(out - ref) / (1.0 + jnp.abs(ref))))
    assert rel_err < 5e-2, f"max relative error {rel_err}"
    print("KERNEL_OK")
</pallas_src>

<mosaic_0001>
module attributes {stable_mosaic.version = 11 : i64} {
  func.func @kernel(%arg0: i32, %arg1: memref<8x9x9x4xf32, #tpu.memory_space<vmem>>, %arg2: memref<9x4x256xbf16, #tpu.memory_space<vmem>>, %arg3: memref<9x128x128xbf16, #tpu.memory_space<vmem>>, %arg4: memref<6x128xf32, #tpu.memory_space<vmem>>, %arg5: memref<128x128xf32, #tpu.memory_space<vmem>>, %arg6: memref<2x10x17x128xf32, #tpu.memory_space<vmem>>) attributes {dimension_semantics = [#tpu.dimension_semantics<arbitrary>], iteration_bounds = array<i64: 1>, scalar_prefetch = 0 : i64, scratch_operands = 1 : i64, tpu.core_type = #tpu.core_type<tc>, window_params = [{pipeline_mode = #tpu.pipeline_mode<synchronous>, transform_indices = @transform_0, window_bounds = array<i64: 8, 9, 9, 4>}, {pipeline_mode = #tpu.pipeline_mode<synchronous>, transform_indices = @transform_1, window_bounds = array<i64: 9, 4, 256>}, {pipeline_mode = #tpu.pipeline_mode<synchronous>, transform_indices = @transform_2, window_bounds = array<i64: 9, 128, 128>}, {pipeline_mode = #tpu.pipeline_mode<synchronous>, transform_indices = @transform_3, window_bounds = array<i64: 6, 128>}, {pipeline_mode = #tpu.pipeline_mode<synchronous>, transform_indices = @transform_4, window_bounds = array<i64: 128, 128>}]} {
    %c0 = arith.constant 0 : index
    %c0_0 = arith.constant 0 : index
    %0 = vector.load %arg4[%c0, %c0_0] : memref<6x128xf32, #tpu.memory_space<vmem>>, vector<6x128xf32>
    %cst = arith.constant 0.000000e+00 : f32
    %1 = vector.broadcast %cst : f32 to vector<128x256xf32>
    %c0_1 = arith.constant 0 : index
    %c0_2 = arith.constant 0 : index
    %c0_3 = arith.constant 0 : index
    %c0_4 = arith.constant 0 : index
    %2 = vector.load %arg1[%c0_1, %c0_2, %c0_3, %c0_4] : memref<8x9x9x4xf32, #tpu.memory_space<vmem>>, vector<2x8x8x4xf32>
    %3 = vector.shape_cast %2 : vector<2x8x8x4xf32> to vector<128x4xf32>
    %4 = arith.truncf %3 : vector<128x4xf32> to vector<128x4xbf16>
    %c0_5 = arith.constant 0 : index
    %c0_6 = arith.constant 0 : index
    %c0_7 = arith.constant 0 : index
    %5 = vector.load %arg2[%c0_5, %c0_6, %c0_7] : memref<9x4x256xbf16, #tpu.memory_space<vmem>>, vector<1x4x256xbf16>
    %6 = vector.shape_cast %5 : vector<1x4x256xbf16> to vector<4x256xbf16>
    %cst_8 = arith.constant dense<0.000000e+00> : vector<128x256xf32>
    %7 = tpu.matmul %4, %6, %cst_8 {dimension_numbers = #tpu.dot_dimension_numbers<[1], [0], [0], [1], [0, 0, 1, 1], [], []>} : vector<128x4xbf16>, vector<4x256xbf16>, vector<128x256xf32> -> vector<128x256xf32>
    %8 = arith.addf %1, %7 : vector<128x256xf32>
    %c2 = arith.constant 2 : index
    %c0_9 = arith.constant 0 : index
    %c0_10 = arith.constant 0 : index
    %c0_11 = arith.constant 0 : index
    %9 = vector.load %arg1[%c2, %c0_9, %c0_10, %c0_11] : memref<8x9x9x4xf32, #tpu.memory_space<vmem>>, vector<2x8x8x4xf32>
    %10 = vector.shape_cast %9 : vector<2x8x8x4xf32> to vector<128x4xf32>
    %11 = arith.truncf %10 : vector<128x4xf32> to vector<128x4xbf16>
    %c1 = arith.constant 1 : index
    %c0_12 = arith.constant 0 : index
    %c0_13 = arith.constant 0 : index
    %12 = vector.load %arg2[%c1, %c0_12, %c0_13] : memref<9x4x256xbf16, #tpu.memory_space<vmem>>, vector<1x4x256xbf16>
    %13 = vector.shape_cast %12 : vector<1x4x256xbf16> to vector<4x256xbf16>
    %cst_14 = arith.constant dense<0.000000e+00> : vector<128x256xf32>
    %14 = tpu.matmul %11, %13, %cst_14 {dimension_numbers = #tpu.dot_dimension_numbers<[1], [0], [0], [1], [0, 0, 1, 1], [], []>} : vector<128x4xbf16>, vector<4x256xbf16>, vector<128x256xf32> -> vector<128x256xf32>
    %15 = arith.addf %8, %14 : vector<128x256xf32>
    %c0_15 = arith.constant 0 : index
    %c0_16 = arith.constant 0 : index
    %c1_17 = arith.constant 1 : index
    %c0_18 = arith.constant 0 : index
    %16 = vector.load %arg1[%c0_15, %c0_16, %c1_17, %c0_18] : memref<8x9x9x4xf32, #tpu.memory_space<vmem>>, vector<2x8x8x4xf32>
    %17 = vector.shape_cast %16 : vector<2x8x8x4xf32> to vector<128x4xf32>
    %18 = arith.truncf %17 : vector<128x4xf32> to vector<128x4xbf16>
    %c2_19 = arith.constant 2 : index
    %c0_20 = arith.constant 0 : index
    %c0_21 = arith.constant 0 : index
    %19 = vector.load %arg2[%c2_19, %c0_20, %c0_21] : memref<9x4x256xbf16, #tpu.memory_space<vmem>>, vector<1x4x256xbf16>
    %20 = vector.shape_cast %19 : vector<1x4x256xbf16> to vector<4x256xbf16>
    %cst_22 = arith.constant dense<0.000000e+00> : vector<128x256xf32>
    %21 = tpu.matmul %18, %20, %cst_22 {dimension_numbers = #tpu.dot_dimension_numbers<[1], [0], [0], [1], [0, 0, 1, 1], [], []>} : vector<128x4xbf16>, vector<4x256xbf16>, vector<128x256xf32> -> vector<128x256xf32>
    %22 = arith.addf %15, %21 : vector<128x256xf32>
    %c4 = arith.constant 4 : index
    %c0_23 = arith.constant 0 : index
    %c0_24 = arith.constant 0 : index
    %c0_25 = arith.constant 0 : index
    %23 = vector.load %arg1[%c4, %c0_23, %c0_24, %c0_25] : memref<8x9x9x4xf32, #tpu.memory_space<vmem>>, vector<2x8x8x4xf32>
    %24 = vector.shape_cast %23 : vector<2x8x8x4xf32> to vector<128x4xf32>
    %25 = arith.truncf %24 : vector<128x4xf32> to vector<128x4xbf16>
    %c3 = arith.constant 3 : index
    %c0_26 = arith.constant 0 : index
    %c0_27 = arith.constant 0 : index
    %26 = vector.load %arg2[%c3, %c0_26, %c0_27] : memref<9x4x256xbf16, #tpu.memory_space<vmem>>, vector<1x4x256xbf16>
    %27 = vector.shape_cast %26 : vector<1x4x256xbf16> to vector<4x256xbf16>
    %cst_28 = arith.constant dense<0.000000e+00> : vector<128x256xf32>
    %28 = tpu.matmul %25, %27, %cst_28 {dimension_numbers = #tpu.dot_dimension_numbers<[1], [0], [0], [1], [0, 0, 1, 1], [], []>} : vector<128x4xbf16>, vector<4x256xbf16>, vector<128x256xf32> -> vector<128x256xf32>
    %29 = arith.addf %22, %28 : vector<128x256xf32>
    %c6 = arith.constant 6 : index
    %c0_29 = arith.constant 0 : index
    %c0_30 = arith.constant 0 : index
    %c0_31 = arith.constant 0 : index
    %30 = vector.load %arg1[%c6, %c0_29, %c0_30, %c0_31] : memref<8x9x9x4xf32, #tpu.memory_space<vmem>>, vector<2x8x8x4xf32>
    %31 = vector.shape_cast %30 : vector<2x8x8x4xf32> to vector<128x4xf32>
    %32 = arith.truncf %31 : vector<128x4xf32> to vector<128x4xbf16>
    %c4_32 = arith.constant 4 : index
    %c0_33 = arith.constant 0 : index
    %c0_34 = arith.constant 0 : index
    %33 = vector.load %arg2[%c4_32, %c0_33, %c0_34] : memref<9x4x256xbf16, #tpu.memory_space<vmem>>, vector<1x4x256xbf16>
    %34 = vector.shape_cast %33 : vector<1x4x256xbf16> to vector<4x256xbf16>
    %cst_35 = arith.constant dense<0.000000e+00> : vector<128x256xf32>
    %35 = tpu.matmul %32, %34, %cst_35 {dimension_numbers = #tpu.dot_dimension_numbers<[1], [0], [0], [1], [0, 0, 1, 1], [], []>} : vector<128x4xbf16>, vector<4x256xbf16>, vector<128x256xf32> -> vector<128x256xf32>
    %36 = arith.addf %29, %35 : vector<128x256xf32>
    %c4_36 = arith.constant 4 : index
    %c0_37 = arith.constant 0 : index
    %c1_38 = arith.constant 1 : index
    %c0_39 = arith.constant 0 : index
    %37 = vector.load %arg1[%c4_36, %c0_37, %c1_38, %c0_39] : memref<8x9x9x4xf32, #tpu.memory_space<vmem>>, vector<2x8x8x4xf32>
    %38 = vector.shape_cast %37 : vector<2x8x8x4xf32> to vector<128x4xf32>
    %39 = arith.truncf %38 : vector<128x4xf32> to vector<128x4xbf16>
    %c5 = arith.constant 5 : index
    %c0_40 = arith.constant 0 : index
    %c0_41 = arith.constant 0 : index
    %40 = vector.load %arg2[%c5, %c0_40, %c0_41] : memref<9x4x256xbf16, #tpu.memory_space<vmem>>, vector<1x4x256xbf16>
    %41 = vector.shape_cast %40 : vector<1x4x256xbf16> to vector<4x256xbf16>
    %cst_42 = arith.constant dense<0.000000e+00> : vector<128x256xf32>
    %42 = tpu.matmul %39, %41, %cst_42 {dimension_numbers = #tpu.dot_dimension_numbers<[1], [0], [0], [1], [0, 0, 1, 1], [], []>} : vector<128x4xbf16>, vector<4x256xbf16>, vector<128x256xf32> -> vector<128x256xf32>
    %43 = arith.addf %36, %42 : vector<128x256xf32>
    %c0_43 = arith.constant 0 : index
    %c1_44 = arith.constant 1 : index
    %c0_45 = arith.constant 0 : index
    %c0_46 = arith.constant 0 : index
    %44 = vector.load %arg1[%c0_43, %c1_44, %c0_45, %c0_46] : memref<8x9x9x4xf32, #tpu.memory_space<vmem>>, vector<2x8x8x4xf32>
    %45 = vector.shape_cast %44 : vector<2x8x8x4xf32> to vector<128x4xf32>
    %46 = arith.truncf %45 : vector<128x4xf32> to vector<128x4xbf16>
    %c6_47 = arith.constant 6 : index
    %c0_48 = arith.constant 0 : index
    %c0_49 = arith.constant 0 : index
    %47 = vector.load %arg2[%c6_47, %c0_48, %c0_49] : memref<9x4x256xbf16, #tpu.memory_space<vmem>>, vector<1x4x256xbf16>
    %48 = vector.shape_cast %47 : vector<1x4x256xbf16> to vector<4x256xbf16>
    %cst_50 = arith.constant dense<0.000000e+00> : vector<128x256xf32>
    %49 = tpu.matmul %46, %48, %cst_50 {dimension_numbers = #tpu.dot_dimension_numbers<[1], [0], [0], [1], [0, 0, 1, 1], [], []>} : vector<128x4xbf16>, vector<4x256xbf16>, vector<128x256xf32> -> vector<128x256xf32>
    %50 = arith.addf %43, %49 : vector<128x256xf32>
    %c2_51 = arith.constant 2 : index
    %c1_52 = arith.constant 1 : index
    %c0_53 = arith.constant 0 : index
    %c0_54 = arith.constant 0 : index
    %51 = vector.load %arg1[%c2_51, %c1_52, %c0_53, %c0_54] : memref<8x9x9x4xf32, #tpu.memory_space<vmem>>, vector<2x8x8x4xf32>
    %52 = vector.shape_cast %51 : vector<2x8x8x4xf32> to vector<128x4xf32>
    %53 = arith.truncf %52 : vector<128x4xf32> to vector<128x4xbf16>
    %c7 = arith.constant 7 : index
    %c0_55 = arith.constant 0 : index
    %c0_56 = arith.constant 0 : index
    %54 = vector.load %arg2[%c7, %c0_55, %c0_56] : memref<9x4x256xbf16, #tpu.memory_space<vmem>>, vector<1x4x256xbf16>
    %55 = vector.shape_cast %54 : vector<1x4x256xbf16> to vector<4x256xbf16>
    %cst_57 = arith.constant dense<0.000000e+00> : vector<128x256xf32>
    %56 = tpu.matmul %53, %55, %cst_57 {dimension_numbers = #tpu.dot_dimension_numbers<[1], [0], [0], [1], [0, 0, 1, 1], [], []>} : vector<128x4xbf16>, vector<4x256xbf16>, vector<128x256xf32> -> vector<128x256xf32>
    %57 = arith.addf %50, %56 : vector<128x256xf32>
    %c0_58 = arith.constant 0 : index
    %c1_59 = arith.constant 1 : index
    %c1_60 = arith.constant 1 : index
    %c0_61 = arith.constant 0 : index
    %58 = vector.load %arg1[%c0_58, %c1_59, %c1_60, %c0_61] : memref<8x9x9x4xf32, #tpu.memory_space<vmem>>, vector<2x8x8x4xf32>
    %59 = vector.shape_cast %58 : vector<2x8x8x4xf32> to vector<128x4xf32>
    %60 = arith.truncf %59 : vector<128x4xf32> to vector<128x4xbf16>
    %c8 = arith.constant 8 : index
    %c0_62 = arith.constant 0 : index
    %c0_63 = arith.constant 0 : index
    %61 = vector.load %arg2[%c8, %c0_62, %c0_63] : memref<9x4x256xbf16, #tpu.memory_space<vmem>>, vector<1x4x256xbf16>
    %62 = vector.shape_cast %61 : vector<1x4x256xbf16> to vector<4x256xbf16>
    %cst_64 = arith.constant dense<0.000000e+00> : vector<128x256xf32>
    %63 = tpu.matmul %60, %62, %cst_64 {dimension_numbers = #tpu.dot_dimension_numbers<[1], [0], [0], [1], [0, 0, 1, 1], [], []>} : vector<128x4xbf16>, vector<4x256xbf16>, vector<128x256xf32> -> vector<128x256xf32>
    %64 = arith.addf %57, %63 : vector<128x256xf32>
    %65 = vector.extract_strided_slice %64 {offsets = [0, 0], sizes = [128, 128], strides = [1, 1]} : vector<128x256xf32> to vector<128x128xf32>
    %66 = vector.extract_strided_slice %0 {offsets = [0, 0], sizes = [1, 128], strides = [1, 1]} : vector<6x128xf32> to vector<1x128xf32>
    %67 = vector.extract_strided_slice %0 {offsets = [1, 0], sizes = [1, 128], strides = [1, 1]} : vector<6x128xf32> to vector<1x128xf32>
    %cst_65 = arith.constant dense<0.000000e+00> : vector<128xf32>
    %68 = vector.multi_reduction <add>, %65, %cst_65 [0] : vector<128x128xf32> to vector<128xf32>
    %69 = vector.shape_cast %68 : vector<128xf32> to vector<1x128xf32>
    %cst_66 = arith.constant 1.280000e+02 : f32
    %70 = vector.broadcast %cst_66 : f32 to vector<1x128xf32>
    %71 = arith.divf %69, %70 : vector<1x128xf32>
    %72 = vector.broadcast %71 : vector<1x128xf32> to vector<128x128xf32>
    %73 = arith.subf %65, %72 : vector<128x128xf32>
    %74 = arith.mulf %73, %73 : vector<128x128xf32>
    %cst_67 = arith.constant dense<0.000000e+00> : vector<128xf32>
    %75 = vector.multi_reduction <add>, %74, %cst_67 [0] : vector<128x128xf32> to vector<128xf32>
    %76 = vector.shape_cast %75 : vector<128xf32> to vector<1x128xf32>
    %cst_68 = arith.constant 1.280000e+02 : f32
    %77 = vector.broadcast %cst_68 : f32 to vector<1x128xf32>
    %78 = arith.divf %76, %77 : vector<1x128xf32>
    %cst_69 = arith.constant 9.99999974E-6 : f32
    %79 = vector.broadcast %cst_69 : f32 to vector<1x128xf32>
    %80 = arith.addf %78, %79 : vector<1x128xf32>
    %81 = math.rsqrt %80 : vector<1x128xf32>
    %82 = arith.mulf %66, %81 : vector<1x128xf32>
    %83 = vector.broadcast %82 : vector<1x128xf32> to vector<128x128xf32>
    %84 = arith.mulf %65, %83 : vector<128x128xf32>
    %85 = arith.mulf %71, %82 : vector<1x128xf32>
    %86 = arith.subf %67, %85 : vector<1x128xf32>
    %87 = vector.broadcast %86 : vector<1x128xf32> to vector<128x128xf32>
    %88 = arith.addf %84, %87 : vector<128x128xf32>
    %cst_70 = arith.constant 0.000000e+00 : f32
    %89 = vector.broadcast %cst_70 : f32 to vector<128x128xf32>
    %90 = arith.maximumf %88, %89 : vector<128x128xf32>
    %cst_71 = arith.constant 0.000000e+00 : f32
    %91 = vector.broadcast %cst_71 : f32 to vector<2x10x17x128xf32>
    %c0_72 = arith.constant 0 : index
    %c0_73 = arith.constant 0 : index
    %c0_74 = arith.constant 0 : index
    %c0_75 = arith.constant 0 : index
    %92 = vector.load %arg6[%c0_72, %c0_73, %c0_74, %c0_75] : memref<2x10x17x128xf32, #tpu.memory_space<vmem>>, vector<2x10x17x128xf32>
    tpu.vector_store %arg6[%c0_72, %c0_73, %c0_74, %c0_75], %91 {strides = array<i32>} : memref<2x10x17x128xf32, #tpu.memory_space<vmem>>, vector<2x10x17x128xf32>,
    %93 = vector.shape_cast %90 : vector<128x128xf32> to vector<2x8x8x128xf32>
    %c0_76 = arith.constant 0 : index
    %c1_77 = arith.constant 1 : index
    %c8_78 = arith.constant 8 : index
    %c0_79 = arith.constant 0 : index
    %94 = vector.load %arg6[%c0_76, %c1_77, %c8_78, %c0_79] : memref<2x10x17x128xf32, #tpu.memory_space<vmem>>, vector<2x8x8x128xf32>
    tpu.vector_store %arg6[%c0_76, %c1_77, %c8_78, %c0_79], %93 {strides = array<i32>} : memref<2x10x17x128xf32, #tpu.memory_space<vmem>>, vector<2x8x8x128xf32>,
    %cst_80 = arith.constant 0.000000e+00 : f32
    %95 = vector.broadcast %cst_80 : f32 to vector<128x128xf32>
    %c0_81 = arith.constant 0 : index
    %c0_82 = arith.constant 0 : index
    %c7_83 = arith.constant 7 : index
    %c0_84 = arith.constant 0 : index
    %96 = vector.load %arg6[%c0_81, %c0_82, %c7_83, %c0_84] : memref<2x10x17x128xf32, #tpu.memory_space<vmem>>, vector<2x8x8x128xf32>
    %97 = vector.shape_cast %96 : vector<2x8x8x128xf32> to vector<128x128xf32>
    %98 = arith.truncf %97 : vector<128x128xf32> to vector<128x128xbf16>
    %c0_85 = arith.constant 0 : index
    %c0_86 = arith.constant 0 : index
    %c0_87 = arith.constant 0 : index
    %99 = vector.load %arg3[%c0_85, %c0_86, %c0_87] : memref<9x128x128xbf16, #tpu.memory_space<vmem>>, vector<1x128x128xbf16>
    %100 = vector.shape_cast %99 : vector<1x128x128xbf16> to vector<128x128xbf16>
    %cst_88 = arith.constant dense<0.000000e+00> : vector<128x128xf32>
    %101 = tpu.matmul %98, %100, %cst_88 {dimension_numbers = #tpu.dot_dimension_numbers<[1], [0], [0], [1], [0, 0, 1, 1], [], []>} : vector<128x128xbf16>, vector<128x128xbf16>, vector<128x128xf32> -> vector<128x128xf32>
    %102 = arith.addf %95, %101 : vector<128x128xf32>
    %c0_89 = arith.constant 0 : index
    %c0_90 = arith.constant 0 : index
    %c8_91 = arith.constant 8 : index
    %c0_92 = arith.constant 0 : index
    %103 = vector.load %arg6[%c0_89, %c0_90, %c8_91, %c0_92] : memref<2x10x17x128xf32, #tpu.memory_space<vmem>>, vector<2x8x8x128xf32>
    %104 = vector.shape_cast %103 : vector<2x8x8x128xf32> to vector<128x128xf32>
    %105 = arith.truncf %104 : vector<128x128xf32> to vector<128x128xbf16>
    %c1_93 = arith.constant 1 : index
    %c0_94 = arith.constant 0 : index
    %c0_95 = arith.constant 0 : index
    %106 = vector.load %arg3[%c1_93, %c0_94, %c0_95] : memref<9x128x128xbf16, #tpu.memory_space<vmem>>, vector<1x128x128xbf16>
    %107 = vector.shape_cast %106 : vector<1x128x128xbf16> to vector<128x128xbf16>
    %cst_96 = arith.constant dense<0.000000e+00> : vector<128x128xf32>
    %108 = tpu.matmul %105, %107, %cst_96 {dimension_numbers = #tpu.dot_dimension_numbers<[1], [0], [0], [1], [0, 0, 1, 1], [], []>} : vector<128x128xbf16>, vector<128x128xbf16>, vector<128x128xf32> -> vector<128x128xf32>
    %109 = arith.addf %102, %108 : vector<128x128xf32>
    %c0_97 = arith.constant 0 : index
    %c0_98 = arith.constant 0 : index
    %c9 = arith.constant 9 : index
    %c0_99 = arith.constant 0 : index
    %110 = vector.load %arg6[%c0_97, %c0_98, %c9, %c0_99] : memref<2x10x17x128xf32, #tpu.memory_space<vmem>>, vector<2x8x8x128xf32>
    %111 = vector.shape_cast %110 : vector<2x8x8x128xf32> to vector<128x128xf32>
    %112 = arith.truncf %111 : vector<128x128xf32> to vector<128x128xbf16>
    %c2_100 = arith.constant 2 : index
    %c0_101 = arith.constant 0 : index
    %c0_102 = arith.constant 0 : index
    %113 = vector.load %arg3[%c2_100, %c0_101, %c0_102] : memref<9x128x128xbf16, #tpu.memory_space<vmem>>, vector<1x128x128xbf16>
    %114 = vector.shape_cast %113 : vector<1x128x128xbf16> to vector<128x128xbf16>
    %cst_103 = arith.constant dense<0.000000e+00> : vector<128x128xf32>
    %115 = tpu.matmul %112, %114, %cst_103 {dimension_numbers = #tpu.dot_dimension_numbers<[1], [0], [0], [1], [0, 0, 1, 1], [], []>} : vector<128x128xbf16>, vector<128x128xbf16>, vector<128x128xf32> -> vector<128x128xf32>
    %116 = arith.addf %109, %115 : vector<128x128xf32>
    %c0_104 = arith.constant 0 : index
    %c1_105 = arith.constant 1 : index
    %c7_106 = arith.constant 7 : index
    %c0_107 = arith.constant 0 : index
    %117 = vector.load %arg6[%c0_104, %c1_105, %c7_106, %c0_107] : memref<2x10x17x128xf32, #tpu.memory_space<vmem>>, vector<2x8x8x128xf32>
    %118 = vector.shape_cast %117 : vector<2x8x8x128xf32> to vector<128x128xf32>
    %119 = arith.truncf %118 : vector<128x128xf32> to vector<128x128xbf16>
    %c3_108 = arith.constant 3 : index
    %c0_109 = arith.constant 0 : index
    %c0_110 = arith.constant 0 : index
    %120 = vector.load %arg3[%c3_108, %c0_109, %c0_110] : memref<9x128x128xbf16, #tpu.memory_space<vmem>>, vector<1x128x128xbf16>
    %121 = vector.shape_cast %120 : vector<1x128x128xbf16> to vector<128x128xbf16>
    %cst_111 = arith.constant dense<0.000000e+00> : vector<128x128xf32>
    %122 = tpu.matmul %119, %121, %cst_111 {dimension_numbers = #tpu.dot_dimension_numbers<[1], [0], [0], [1], [0, 0, 1, 1], [], []>} : vector<128x128xbf16>, vector<128x128xbf16>, vector<128x128xf32> -> vector<128x128xf32>
    %123 = arith.addf %116, %122 : vector<128x128xf32>
    %c0_112 = arith.constant 0 : index
    %c1_113 = arith.constant 1 : index
    %c8_114 = arith.constant 8 : index
    %c0_115 = arith.constant 0 : index
    %124 = vector.load %arg6[%c0_112, %c1_113, %c8_114, %c0_115] : memref<2x10x17x128xf32, #tpu.memory_space<vmem>>, vector<2x8x8x128xf32>
    %125 = vector.shape_cast %124 : vector<2x8x8x128xf32> to vector<128x128xf32>
    %126 = arith.truncf %125 : vector<128x128xf32> to vector<128x128xbf16>
    %c4_116 = arith.constant 4 : index
    %c0_117 = arith.constant 0 : index
    %c0_118 = arith.constant 0 : index
    %127 = vector.load %arg3[%c4_116, %c0_117, %c0_118] : memref<9x128x128xbf16, #tpu.memory_space<vmem>>, vector<1x128x128xbf16>
    %128 = vector.shape_cast %127 : vector<1x128x128xbf16> to vector<128x128xbf16>
    %cst_119 = arith.constant dense<0.000000e+00> : vector<128x128xf32>
    %129 = tpu.matmul %126, %128, %cst_119 {dimension_numbers = #tpu.dot_dimension_numbers<[1], [0], [0], [1], [0, 0, 1, 1], [], []>} : vector<128x128xbf16>, vector<128x128xbf16>, vector<128x128xf32> -> vector<128x128xf32>
    %130 = arith.addf %123, %129 : vector<128x128xf32>
    %c0_120 = arith.constant 0 : index
    %c1_121 = arith.constant 1 : index
    %c9_122 = arith.constant 9 : index
    %c0_123 = arith.constant 0 : index
    %131 = vector.load %arg6[%c0_120, %c1_121, %c9_122, %c0_123] : memref<2x10x17x128xf32, #tpu.memory_space<vmem>>, vector<2x8x8x128xf32>
    %132 = vector.shape_cast %131 : vector<2x8x8x128xf32> to vector<128x128xf32>
    %133 = arith.truncf %132 : vector<128x128xf32> to vector<128x128xbf16>
    %c5_124 = arith.constant 5 : index
    %c0_125 = arith.constant 0 : index
    %c0_126 = arith.constant 0 : index
    %134 = vector.load %arg3[%c5_124, %c0_125, %c0_126] : memref<9x128x128xbf16, #tpu.memory_space<vmem>>, vector<1x128x128xbf16>
    %135 = vector.shape_cast %134 : vector<1x128x128xbf16> to vector<128x128xbf16>
    %cst_127 = arith.constant dense<0.000000e+00> : vector<128x128xf32>
    %136 = tpu.matmul %133, %135, %cst_127 {dimension_numbers = #tpu.dot_dimension_numbers<[1], [0], [0], [1], [0, 0, 1, 1], [], []>} : vector<128x128xbf16>, vector<128x128xbf16>, vector<128x128xf32> -> vector<128x128xf32>
    %137 = arith.addf %130, %136 : vector<128x128xf32>
    %c0_128 = arith.constant 0 : index
    %c2_129 = arith.constant 2 : index
    %c7_130 = arith.constant 7 : index
    %c0_131 = arith.constant 0 : index
    %138 = vector.load %arg6[%c0_128, %c2_129, %c7_130, %c0_131] : memref<2x10x17x128xf32, #tpu.memory_space<vmem>>, vector<2x8x8x128xf32>
    %139 = vector.shape_cast %138 : vector<2x8x8x128xf32> to vector<128x128xf32>
    %140 = arith.truncf %139 : vector<128x128xf32> to vector<128x128xbf16>
    %c6_132 = arith.constant 6 : index
    %c0_133 = arith.constant 0 : index
    %c0_134 = arith.constant 0 : index
    %141 = vector.load %arg3[%c6_132, %c0_133, %c0_134] : memref<9x128x128xbf16, #tpu.memory_space<vmem>>, vector<1x128x128xbf16>
    %142 = vector.shape_cast %141 : vector<1x128x128xbf16> to vector<128x128xbf16>
    %cst_135 = arith.constant dense<0.000000e+00> : vector<128x128xf32>
    %143 = tpu.matmul %140, %142, %cst_135 {dimension_numbers = #tpu.dot_dimension_numbers<[1], [0], [0], [1], [0, 0, 1, 1], [], []>} : vector<128x128xbf16>, vector<128x128xbf16>, vector<128x128xf32> -> vector<128x128xf32>
    %144 = arith.addf %137, %143 : vector<128x128xf32>
    %c0_136 = arith.constant 0 : index
    %c2_137 = arith.constant 2 : index
    %c8_138 = arith.constant 8 : index
    %c0_139 = arith.constant 0 : index
    %145 = vector.load %arg6[%c0_136, %c2_137, %c8_138, %c0_139] : memref<2x10x17x128xf32, #tpu.memory_space<vmem>>, vector<2x8x8x128xf32>
    %146 = vector.shape_cast %145 : vector<2x8x8x128xf32> to vector<128x128xf32>
    %147 = arith.truncf %146 : vector<128x128xf32> to vector<128x128xbf16>
    %c7_140 = arith.constant 7 : index
    %c0_141 = arith.constant 0 : index
    %c0_142 = arith.constant 0 : index
    %148 = vector.load %arg3[%c7_140, %c0_141, %c0_142] : memref<9x128x128xbf16, #tpu.memory_space<vmem>>, vector<1x128x128xbf16>
    %149 = vector.shape_cast %148 : vector<1x128x128xbf16> to vector<128x128xbf16>
    %cst_143 = arith.constant dense<0.000000e+00> : vector<128x128xf32>
    %150 = tpu.matmul %147, %149, %cst_143 {dimension_numbers = #tpu.dot_dimension_numbers<[1], [0], [0], [1], [0, 0, 1, 1], [], []>} : vector<128x128xbf16>, vector<128x128xbf16>, vector<128x128xf32> -> vector<128x128xf32>
    %151 = arith.addf %144, %150 : vector<128x128xf32>
    %c0_144 = arith.constant 0 : index
    %c2_145 = arith.constant 2 : index
    %c9_146 = arith.constant 9 : index
    %c0_147 = arith.constant 0 : index
    %152 = vector.load %arg6[%c0_144, %c2_145, %c9_146, %c0_147] : memref<2x10x17x128xf32, #tpu.memory_space<vmem>>, vector<2x8x8x128xf32>
    %153 = vector.shape_cast %152 : vector<2x8x8x128xf32> to vector<128x128xf32>
    %154 = arith.truncf %153 : vector<128x128xf32> to vector<128x128xbf16>
    %c8_148 = arith.constant 8 : index
    %c0_149 = arith.constant 0 : index
    %c0_150 = arith.constant 0 : index
    %155 = vector.load %arg3[%c8_148, %c0_149, %c0_150] : memref<9x128x128xbf16, #tpu.memory_space<vmem>>, vector<1x128x128xbf16>
    %156 = vector.shape_cast %155 : vector<1x128x128xbf16> to vector<128x128xbf16>
    %cst_151 = arith.constant dense<0.000000e+00> : vector<128x128xf32>
    %157 = tpu.matmul %154, %156, %cst_151 {dimension_numbers = #tpu.dot_dimension_numbers<[1], [0], [0], [1], [0, 0, 1, 1], [], []>} : vector<128x128xbf16>, vector<128x128xbf16>, vector<128x128xf32> -> vector<128x128xf32>
    %158 = arith.addf %151, %157 : vector<128x128xf32>
    %159 = vector.extract_strided_slice %0 {offsets = [2, 0], sizes = [1, 128], strides = [1, 1]} : vector<6x128xf32> to vector<1x128xf32>
    %160 = vector.extract_strided_slice %0 {offsets = [3, 0], sizes = [1, 128], strides = [1, 1]} : vector<6x128xf32> to vector<1x128xf32>
    %cst_152 = arith.constant dense<0.000000e+00> : vector<128xf32>
    %161 = vector.multi_reduction <add>, %158, %cst_152 [0] : vector<128x128xf32> to vector<128xf32>
    %162 = vector.shape_cast %161 : vector<128xf32> to vector<1x128xf32>
    %cst_153 = arith.constant 1.280000e+02 : f32
    %163 = vector.broadcast %cst_153 : f32 to vector<1x128xf32>
    %164 = arith.divf %162, %163 : vector<1x128xf32>
    %165 = vector.broadcast %164 : vector<1x128xf32> to vector<128x128xf32>
    %166 = arith.subf %158, %165 : vector<128x128xf32>
    %167 = arith.mulf %166, %166 : vector<128x128xf32>
    %cst_154 = arith.constant dense<0.000000e+00> : vector<128xf32>
    %168 = vector.multi_reduction <add>, %167, %cst_154 [0] : vector<128x128xf32> to vector<128xf32>
    %169 = vector.shape_cast %168 : vector<128xf32> to vector<1x128xf32>
    %cst_155 = arith.constant 1.280000e+02 : f32
    %170 = vector.broadcast %cst_155 : f32 to vector<1x128xf32>
    %171 = arith.divf %169, %170 : vector<1x128xf32>
    %cst_156 = arith.constant 9.99999974E-6 : f32
    %172 = vector.broadcast %cst_156 : f32 to vector<1x128xf32>
    %173 = arith.addf %171, %172 : vector<1x128xf32>
    %174 = math.rsqrt %173 : vector<1x128xf32>
    %175 = arith.mulf %159, %174 : vector<1x128xf32>
    %176 = vector.broadcast %175 : vector<1x128xf32> to vector<128x128xf32>
    %177 = arith.mulf %158, %176 : vector<128x128xf32>
    %178 = arith.mulf %164, %175 : vector<1x128xf32>
    %179 = arith.subf %160, %178 : vector<1x128xf32>
    %180 = vector.broadcast %179 : vector<1x128xf32> to vector<128x128xf32>
    %181 = arith.addf %177, %180 : vector<128x128xf32>
    %182 = vector.extract_strided_slice %64 {offsets = [0, 128], sizes = [128, 128], strides = [1, 1]} : vector<128x256xf32> to vector<128x128xf32>
    %183 = vector.extract_strided_slice %0 {offsets = [4, 0], sizes = [1, 128], strides = [1, 1]} : vector<6x128xf32> to vector<1x128xf32>
    %184 = vector.extract_strided_slice %0 {offsets = [5, 0], sizes = [1, 128], strides = [1, 1]} : vector<6x128xf32> to vector<1x128xf32>
    %cst_157 = arith.constant dense<0.000000e+00> : vector<128xf32>
    %185 = vector.multi_reduction <add>, %182, %cst_157 [0] : vector<128x128xf32> to vector<128xf32>
    %186 = vector.shape_cast %185 : vector<128xf32> to vector<1x128xf32>
    %cst_158 = arith.constant 1.280000e+02 : f32
    %187 = vector.broadcast %cst_158 : f32 to vector<1x128xf32>
    %188 = arith.divf %186, %187 : vector<1x128xf32>
    %189 = vector.broadcast %188 : vector<1x128xf32> to vector<128x128xf32>
    %190 = arith.subf %182, %189 : vector<128x128xf32>
    %191 = arith.mulf %190, %190 : vector<128x128xf32>
    %cst_159 = arith.constant dense<0.000000e+00> : vector<128xf32>
    %192 = vector.multi_reduction <add>, %191, %cst_159 [0] : vector<128x128xf32> to vector<128xf32>
    %193 = vector.shape_cast %192 : vector<128xf32> to vector<1x128xf32>
    %cst_160 = arith.constant 1.280000e+02 : f32
    %194 = vector.broadcast %cst_160 : f32 to vector<1x128xf32>
    %195 = arith.divf %193, %194 : vector<1x128xf32>
    %cst_161 = arith.constant 9.99999974E-6 : f32
    %196 = vector.broadcast %cst_161 : f32 to vector<1x128xf32>
    %197 = arith.addf %195, %196 : vector<1x128xf32>
    %198 = math.rsqrt %197 : vector<1x128xf32>
    %199 = arith.mulf %183, %198 : vector<1x128xf32>
    %200 = vector.broadcast %199 : vector<1x128xf32> to vector<128x128xf32>
    %201 = arith.mulf %182, %200 : vector<128x128xf32>
    %202 = arith.mulf %188, %199 : vector<1x128xf32>
    %203 = arith.subf %184, %202 : vector<1x128xf32>
    %204 = vector.broadcast %203 : vector<1x128xf32> to vector<128x128xf32>
    %205 = arith.addf %201, %204 : vector<128x128xf32>
    %206 = arith.addf %181, %205 : vector<128x128xf32>
    %cst_162 = arith.constant 0.000000e+00 : f32
    %207 = vector.broadcast %cst_162 : f32 to vector<128x128xf32>
    %208 = arith.maximumf %206, %207 : vector<128x128xf32>
    %c0_163 = arith.constant 0 : index
    %c0_164 = arith.constant 0 : index
    %209 = vector.load %arg5[%c0_163, %c0_164] : memref<128x128xf32, #tpu.memory_space<vmem>>, vector<128x128xf32>
    tpu.vector_store %arg5[%c0_163, %c0_164], %208 {strides = array<i32>} : memref<128x128xf32, #tpu.memory_space<vmem>>, vector<128x128xf32>,
    return
  }
  func.func @transform_0(%arg0: i32) -> (i32, i32, i32, i32) {
    %c0_i32 = arith.constant 0 : i32
    %c0_i32_0 = arith.constant 0 : i32
    %c0_i32_1 = arith.constant 0 : i32
    %c0_i32_2 = arith.constant 0 : i32
    %c0_i32_3 = arith.constant 0 : i32
    return %c0_i32, %c0_i32_0, %c0_i32_1, %c0_i32_2 : i32, i32, i32, i32
  }
  func.func @transform_1(%arg0: i32) -> (i32, i32, i32) {
    %c0_i32 = arith.constant 0 : i32
    %c0_i32_0 = arith.constant 0 : i32
    %c0_i32_1 = arith.constant 0 : i32
    %c0_i32_2 = arith.constant 0 : i32
    return %c0_i32, %c0_i32_0, %c0_i32_1 : i32, i32, i32
  }
  func.func @transform_2(%arg0: i32) -> (i32, i32, i32) {
    %c0_i32 = arith.constant 0 : i32
    %c0_i32_0 = arith.constant 0 : i32
    %c0_i32_1 = arith.constant 0 : i32
    %c0_i32_2 = arith.constant 0 : i32
    return %c0_i32, %c0_i32_0, %c0_i32_1 : i32, i32, i32
  }
  func.func @transform_3(%arg0: i32) -> (i32, i32) {
    %c0_i32 = arith.constant 0 : i32
    %c0_i32_0 = arith.constant 0 : i32
    %c0_i32_1 = arith.constant 0 : i32
    return %c0_i32, %c0_i32_0 : i32, i32
  }
  func.func @transform_4(%arg0: i32) -> (i32, i32) {
    %c0_i32 = arith.constant 0 : i32
    %c0_i32_0 = arith.constant 0 : i32
    %c0_i32_1 = arith.constant 0 : i32
    return %c0_i32, %c0_i32_0 : i32, i32
  }
}

</mosaic_0001>

<bundles_post_ra>
// kernel: tpu_custom_call.1
= control target key start
LH: loop header
LB: loop body
LE: loop exit
PB: predicated region body
PF: predicated region fallthrough
CT: control target
= control target key end

     0   :  { %vm106_vm0 = vcmask 1041408   ;;  %v5503_v3 = vmov 0   ;;  %vm81_vm1 = vcmask 31744   ;;  %s7172_s0 = inlined_call_operand.vmem [shape: f32[8,9,9,4], index: 0, kind: input, shape index: {}]   ;;  %s7173_s1 = inlined_call_operand.vmem [shape: bf16[9,4,256], index: 1, kind: input, shape index: {}]   ;;  %s7174_s2 = inlined_call_operand.vmem [shape: bf16[9,128,128], index: 2, kind: input, shape index: {}]   ;;  %s7175_s3 = inlined_call_operand.vmem [shape: f32[6,128], index: 3, kind: input, shape index: {}]   ;;  %s7176_s4 = inlined_call_operand.hbm [shape: f32[128,128], index: 4, kind: output, shape index: {}]  }
   0x1   :  { %v4206_v0 = vld.sshfl [vmem:[%s7173_s1 + $0x8] sm:$0x33 pattern:$0x76325410]  ;;  %475 = vmatprep.mubr.bf16.mxu0 %v5503_v3  ;;  %v5544_v5 = vld [vmem:[%s7172_s0 + $0x11] sm:$0xff]  ;;  %145 = vmatprep.mubr.bf16.mxu1 %v5503_v3  ;;  %v4216_v33 = vld [vmem:[%s7172_s0 + $0x240] sm:$0xff] }
   0x2   :  { %v412_v1 = vcombine.high %v4206_v0, %v4206_v0  ;;  %v438_v2 = vsel %vm106_vm0, %v4206_v0, 0  ;;  %v378_v4 = vld [vmem:[%s7172_s0 + $0x1] sm:$0xff]  ;;  %v4233_v6 = vld.sshfl [vmem:[%s7173_s1 + $0xc] sm:$0x33 pattern:$0x76325410] }
   0x3   :  { %v394_v7 = vpack.c.bf16 %v5544_v5, %v378_v4  ;;  %v623_v8 = vcombine.high %v4233_v6, %v4233_v6  ;;  %v649_v9 = vsel %vm106_vm0, %v4233_v6, 0  ;;  %v4260_v10 = vld.sshfl [vmem:[%s7173_s1 + $0x10] sm:$0x33 pattern:$0x76325410]  ;;  %v5562_v11 = vld [vmem:[%s7172_s0 + $0x21] sm:$0xff] }
   0x4   :  { %4207 = vmatprep.subr.msk.bf16.mxu0 %vm106_vm0, %v412_v1  ;;  %v5567_v12 = vld [vmem:[%s7172_s0 + $0x31] sm:$0xff]  ;;  %v834_v13 = vcombine.high %v4260_v10, %v4260_v10  ;;  %v5577_v15 = vld [vmem:[%s7172_s0 + $0x41] sm:$0xff] }
   0x5   :  { %444 = vmatpush1.bf16.msra.mxu0 %v438_v2  ;;  %v395_v14 = vpack.c.bf16 %v5567_v12, %v5562_v11  ;;  %v5582_v16 = vld [vmem:[%s7172_s0 + $0x51] sm:$0xff]  ;;  %v5591_v18 = vld [vmem:[%s7172_s0 + $0x61] sm:$0xff] }
   0x6   :  { %4234 = vmatprep.subr.msk.bf16.mxu0 %vm106_vm0, %v623_v8  ;;  %v396_v17 = vpack.c.bf16 %v5582_v16, %v5577_v15  ;;  %v5596_v19 = vld [vmem:[%s7172_s0 + $0x71] sm:$0xff]  ;;  %v5608_v22 = vld [vmem:[%s7172_s0 + $0xa1] sm:$0xff] }
   0x7   :  { %v397_v20 = vpack.c.bf16 %v5596_v19, %v5591_v18  ;;  %v386_v21 = vld [vmem:[%s7172_s0 + $0x91] sm:$0xff]  ;;  %v5621_v25 = vld [vmem:[%s7172_s0 + $0xc1] sm:$0xff] }
   0x8   :  { %4208 = vmatmul.mubr.msk.bf16.vlgmr.msra.gmra.mrb[0].mxu0 %vm81_vm1, %v394_v7  ;;  %v398_v23 = vpack.c.bf16 %v5608_v22, %v386_v21  ;;  %v5616_v24 = vld [vmem:[%s7172_s0 + $0xb1] sm:$0xff]  ;;  %v5635_v28 = vld [vmem:[%s7172_s0 + $0xe1] sm:$0xff] }
   0x9   :  { %655 = vmatpush1.bf16.msra.mxu0 %v649_v9  ;;  %485 = vmatprep.mubr.bf16.mxu0 %v5503_v3  ;;  %v399_v26 = vpack.c.bf16 %v5621_v25, %v5616_v24  ;;  %v5630_v27 = vld [vmem:[%s7172_s0 + $0xd1] sm:$0xff]  ;;  %v5649_v31 = vld [vmem:[%s7172_s0 + $0x101] sm:$0xff] }
   0xa   :  { %4261 = vmatprep.subr.msk.bf16.mxu0 %vm106_vm0, %v834_v13  ;;  %v400_v29 = vpack.c.bf16 %v5635_v28, %v5630_v27  ;;  %v5644_v30 = vld [vmem:[%s7172_s0 + $0xf1] sm:$0xff] }
   0xb   :  { %v401_v32 = vpack.c.bf16 %v5649_v31, %v5644_v30  ;;  %v4217_v34 = vld [vmem:[%s7172_s0 + $0x250] sm:$0xff] }
   0xc   :  { %v4287_v35 = vld.sshfl [vmem:[%s7173_s1 + $0x14] sm:$0x33 pattern:$0x76325410]  ;;  %v605_v36 = vpack.c.bf16 %v4217_v34, %v4216_v33 }
  0x10   :  { %4209 = vmatmul.mubr.msk.bf16.gmra.mrb[4].mxu0 %vm81_vm1, %v395_v14 }
  0x11   :  { %495 = vmatprep.mubr.bf16.mxu0 %v5503_v3 }
  0x18   :  { %4210 = vmatmul.mubr.msk.bf16.gmra.mrb[8].mxu0 %vm81_vm1, %v396_v17 }
  0x19   :  { %505 = vmatprep.mubr.bf16.mxu0 %v5503_v3 }
  0x20   :  { %4211 = vmatmul.mubr.msk.bf16.gmra.mrb[12].mxu0 %vm81_vm1, %v397_v20 }
  0x21   :  { %515 = vmatprep.mubr.bf16.mxu0 %v5503_v3 }
  0x28   :  { %4212 = vmatmul.mubr.msk.bf16.gmra.mrb[16].mxu0 %vm81_vm1, %v398_v23 }
  0x29   :  { %525 = vmatprep.mubr.bf16.mxu0 %v5503_v3 }
  0x30   :  { %4213 = vmatmul.mubr.msk.bf16.gmra.mrb[20].mxu0 %vm81_vm1, %v399_v26 }
  0x31   :  { %535 = vmatprep.mubr.bf16.mxu0 %v5503_v3 }
  0x38   :  { %4214 = vmatmul.mubr.msk.bf16.gmra.mrb[24].mxu0 %vm81_vm1, %v400_v29 }
  0x39   :  { %545 = vmatprep.mubr.bf16.mxu0 %v5503_v3 }
  0x40   :  { %4215 = vmatmul.mubr.msk.bf16.gmra.mrb[28].mxu0 %vm81_vm1, %v401_v32 }
  0x41   :  { %686 = vmatprep.mubr.bf16.mxu0 %v5503_v3 }
  0x42   :  { %9 = vsyncpa [#allocation4], 0  ;;  %v860_v37 = vsel %vm106_vm0, %v4260_v10, 0  ;;  %v1044_v38 = vcombine.high %v4287_v35, %v4287_v35  ;;  %v4218_v39 = vld [vmem:[%s7172_s0 + $0x260] sm:$0xff]  ;;  %v4219_v40 = vld [vmem:[%s7172_s0 + $0x270] sm:$0xff]  ;;  %v1070_v8 = vsel %vm106_vm0, %v4287_v35, 0 }
  0x43   :  { %v606_v41 = vpack.c.bf16 %v4219_v40, %v4218_v39  ;;  %v4220_v42 = vld [vmem:[%s7172_s0 + $0x280] sm:$0xff]  ;;  %v4221_v43 = vld [vmem:[%s7172_s0 + $0x290] sm:$0xff]  ;;  %v5747_v6 = vld.sshfl [vmem:[%s7173_s1 + $0x18] sm:$0x33 pattern:$0x76325410] }
  0x44   :  { %v607_v44 = vpack.c.bf16 %v4221_v43, %v4220_v42  ;;  %v4222_v45 = vld [vmem:[%s7172_s0 + $0x2a0] sm:$0xff]  ;;  %v4223_v46 = vld [vmem:[%s7172_s0 + $0x2b0] sm:$0xff]  ;;  %v1255_v9 = vcombine.high %v5747_v6, %v5747_v6 }
  0x45   :  { %v608_v47 = vpack.c.bf16 %v4223_v46, %v4222_v45  ;;  %v4224_v48 = vld [vmem:[%s7172_s0 + $0x2d0] sm:$0xff]  ;;  %v4225_v49 = vld [vmem:[%s7172_s0 + $0x2e0] sm:$0xff] }
  0x46   :  { %v609_v50 = vpack.c.bf16 %v4225_v49, %v4224_v48  ;;  %v4226_v51 = vld [vmem:[%s7172_s0 + $0x2f0] sm:$0xff]  ;;  %v4227_v52 = vld [vmem:[%s7172_s0 + $0x300] sm:$0xff] }
  0x47   :  { %v610_v53 = vpack.c.bf16 %v4227_v52, %v4226_v51  ;;  %v4228_v54 = vld [vmem:[%s7172_s0 + $0x310] sm:$0xff]  ;;  %v4229_v55 = vld [vmem:[%s7172_s0 + $0x320] sm:$0xff] }
  0x48   :  { %4235 = vmatmul.mubr.msk.bf16.vlgmr.msra.gmra.mrb[0].mxu0 %vm81_vm1, %v605_v36  ;;  %v611_v56 = vpack.c.bf16 %v4229_v55, %v4228_v54  ;;  %v4230_v57 = vld [vmem:[%s7172_s0 + $0x330] sm:$0xff]  ;;  %v4231_v58 = vld [vmem:[%s7172_s0 + $0x340] sm:$0xff] }
  0x49   :  { %866 = vmatpush1.bf16.msra.mxu0 %v860_v37  ;;  %696 = vmatprep.mubr.bf16.mxu0 %v5503_v3  ;;  %v612_v59 = vpack.c.bf16 %v4231_v58, %v4230_v57  ;;  %v4185_v60 = vld.sshfl [vmem:[%s7173_s1 + $0x4] sm:$0x33 pattern:$0x76325410]  ;;  %v5733_v0 = vld [vmem:[%s7172_s0 + $0x130] sm:$0xff] }
  0x4a   :  { %4288 = vmatprep.subr.msk.bf16.mxu0 %vm106_vm0, %v1044_v38  ;;  %v80_v61 = vcombine.high %v4185_v60, %v4185_v60  ;;  %v108_v62 = vsel %vm106_vm0, %v4185_v60, 0  ;;  %v4168_v63 = vld [vmem:[%s7172_s0 + $0x120] sm:$0xff]  ;;  %v4244_v2 = vld [vmem:[%s7172_s0 + $0x370] sm:$0xff] }
  0x4b   :  { %v4243_v1 = vld [vmem:[%s7172_s0 + $0x360] sm:$0xff]  ;;  %v62_v4 = vpack.c.bf16 %v5733_v0, %v4168_v63  ;;  %v4246_v13 = vld [vmem:[%s7172_s0 + $0x390] sm:$0xff] }
  0x4c   :  { %4186 = vmatprep.subr.msk.bf16.mxu1 %vm106_vm0, %v80_v61  ;;  %v816_v7 = vpack.c.bf16 %v4244_v2, %v4243_v1  ;;  %v4245_v10 = vld [vmem:[%s7172_s0 + $0x380] sm:$0xff]  ;;  %v5770_v17 = vld [vmem:[%s7172_s0 + $0x150] sm:$0xff] }
  0x4d   :  { %114 = vmatpush1.bf16.msra.mxu1 %v108_v62  ;;  %v5765_v14 = vld [vmem:[%s7172_s0 + $0x140] sm:$0xff]  ;;  %v817_v21 = vpack.c.bf16 %v4246_v13, %v4245_v10  ;;  %v5786_v26 = vld [vmem:[%s7172_s0 + $0x170] sm:$0xff] }
  0x4e   :  { %v63_v20 = vpack.c.bf16 %v5770_v17, %v5765_v14  ;;  %v5781_v23 = vld [vmem:[%s7172_s0 + $0x160] sm:$0xff]  ;;  %v4248_v32 = vld [vmem:[%s7172_s0 + $0x3b0] sm:$0xff] }
  0x4f   :  { %v4247_v29 = vld [vmem:[%s7172_s0 + $0x3a0] sm:$0xff]  ;;  %v64_v33 = vpack.c.bf16 %v5786_v26, %v5781_v23  ;;  %v5808_v36 = vld [vmem:[%s7172_s0 + $0x190] sm:$0xff] }
  0x50   :  { %4236 = vmatmul.mubr.msk.bf16.gmra.mrb[4].mxu0 %vm81_vm1, %v606_v41  ;;  %4187 = vmatmul.mubr.msk.bf16.vlgmr.msra.gmra.mrb[0].mxu1 %vm81_vm1, %v62_v4  ;;  %v818_v34 = vpack.c.bf16 %v4248_v32, %v4247_v29  ;;  %v5803_v35 = vld [vmem:[%s7172_s0 + $0x180] sm:$0xff]  ;;  %v4250_v38 = vld [vmem:[%s7172_s0 + $0x3d0] sm:$0xff]  ;;  %v5933_v29 = vld.sshfl [vmem:[%s7173_s1 + $0x1c] sm:$0x33 pattern:$0x76325410] }
  0x51   :  { %706 = vmatprep.mubr.bf16.mxu0 %v5503_v3  ;;  %155 = vmatprep.mubr.bf16.mxu1 %v5503_v3  ;;  %v4249_v37 = vld [vmem:[%s7172_s0 + $0x3c0] sm:$0xff]  ;;  %v65_v39 = vpack.c.bf16 %v5808_v36, %v5803_v35  ;;  %v4176_v41 = vld [vmem:[%s7172_s0 + $0x1b0] sm:$0xff] }
  0x52   :  { %v819_v40 = vpack.c.bf16 %v4250_v38, %v4249_v37  ;;  %v5828_v42 = vld [vmem:[%s7172_s0 + $0x1c0] sm:$0xff]  ;;  %v4251_v43 = vld [vmem:[%s7172_s0 + $0x3f0] sm:$0xff] }
  0x53   :  { %v66_v45 = vpack.c.bf16 %v5828_v42, %v4176_v41  ;;  %v5849_v48 = vld [vmem:[%s7172_s0 + $0x1e0] sm:$0xff]  ;;  %v4253_v49 = vld [vmem:[%s7172_s0 + $0x410] sm:$0xff]  ;;  %v1449_v41 = vpack.c.bf16 %v5781_v23, %v5770_v17 }
  0x54   :  { %v5871_v54 = vld [vmem:[%s7172_s0 + $0x200] sm:$0xff]  ;;  %v4255_v55 = vld [vmem:[%s7172_s0 + $0x430] sm:$0xff] }
  0x55   :  { %v5893_v60 = vld [vmem:[%s7172_s0 + $0x220] sm:$0xff]  ;;  %v4257_v61 = vld [vmem:[%s7172_s0 + $0x450] sm:$0xff] }
  0x56   :  { %v4258_v62 = vld [vmem:[%s7172_s0 + $0x460] sm:$0xff]  ;;  %v4271_v13 = vld [vmem:[%s7172_s0 + $0x251] sm:$0xff] }
  0x57   :  { %v823_v1 = vpack.c.bf16 %v4258_v62, %v4257_v61  ;;  %v4195_v2 = vld.sshfl [vmem:[%s7173_s1] sm:$0x33 pattern:$0x76325410]  ;;  %v5950_v38 = vld [vmem:[%s7172_s0 + $0x30] sm:$0xff] }
  0x58   :  { %4237 = vmatmul.mubr.msk.bf16.gmra.mrb[8].mxu0 %vm81_vm1, %v607_v44  ;;  %4188 = vmatmul.mubr.msk.bf16.gmra.mrb[4].mxu1 %vm81_vm1, %v63_v20  ;;  %v4252_v44 = vld [vmem:[%s7172_s0 + $0x400] sm:$0xff]  ;;  %v234_v4 = vcombine.high %v4195_v2, %v4195_v2  ;;  %v4339_v17 = vld [vmem:[%s7172_s0 + $0x230] sm:$0xff] }
  0x59   :  { %716 = vmatprep.mubr.bf16.mxu0 %v5503_v3  ;;  %165 = vmatprep.mubr.bf16.mxu1 %v5503_v3  ;;  %v820_v46 = vpack.c.bf16 %v4252_v44, %v4251_v43  ;;  %v4270_v10 = vld [vmem:[%s7172_s0 + $0x241] sm:$0xff]  ;;  %v1455_v23 = vpack.c.bf16 %v4339_v17, %v5893_v60 }
  0x5a   :  { %4196 = vmatprep.subr.msk.bf16.mxu1 %vm106_vm0, %v234_v4  ;;  %v1026_v32 = vpack.c.bf16 %v4271_v13, %v4270_v10  ;;  %v5945_v37 = vld [vmem:[%s7172_s0 + $0x20] sm:$0xff]  ;;  %v4306_v13 = vld [vmem:[%s7172_s0 + $0xb0] sm:$0xff] }
  0x5b   :  { %v5970_v44 = vld [vmem:[%s7172_s0 + $0x40] sm:$0xff] }
  0x5c   :  { %v4279_v4 = vld [vmem:[%s7172_s0 + $0x2e1] sm:$0xff] }
  0x60   :  { %4238 = vmatmul.mubr.msk.bf16.gmra.mrb[12].mxu0 %vm81_vm1, %v608_v47  ;;  %4189 = vmatmul.mubr.msk.bf16.gmra.mrb[8].mxu1 %vm81_vm1, %v64_v33  ;;  %v5844_v47 = vld [vmem:[%s7172_s0 + $0x1d0] sm:$0xff]  ;;  %v1281_v33 = vsel %vm106_vm0, %v5747_v6, 0  ;;  %v4272_v6 = vld [vmem:[%s7172_s0 + $0x261] sm:$0xff] }
  0x61   :  { %726 = vmatprep.mubr.bf16.mxu0 %v5503_v3  ;;  %175 = vmatprep.mubr.bf16.mxu1 %v5503_v3  ;;  %v67_v51 = vpack.c.bf16 %v5849_v48, %v5844_v47 }
  0x68   :  { %4239 = vmatmul.mubr.msk.bf16.gmra.mrb[16].mxu0 %vm81_vm1, %v609_v50  ;;  %4190 = vmatmul.mubr.msk.bf16.gmra.mrb[12].mxu1 %vm81_vm1, %v65_v39  ;;  %v4254_v50 = vld [vmem:[%s7172_s0 + $0x420] sm:$0xff]  ;;  %v4273_v39 = vld [vmem:[%s7172_s0 + $0x271] sm:$0xff] }
  0x69   :  { %736 = vmatprep.mubr.bf16.mxu0 %v5503_v3  ;;  %185 = vmatprep.mubr.bf16.mxu1 %v5503_v3  ;;  %v821_v52 = vpack.c.bf16 %v4254_v50, %v4253_v49  ;;  %v1027_v43 = vpack.c.bf16 %v4273_v39, %v4272_v6  ;;  %v4275_v49 = vld [vmem:[%s7172_s0 + $0x291] sm:$0xff] }
  0x70   :  { %4240 = vmatmul.mubr.msk.bf16.gmra.mrb[20].mxu0 %vm81_vm1, %v610_v53  ;;  %4191 = vmatmul.mubr.msk.bf16.gmra.mrb[16].mxu1 %vm81_vm1, %v66_v45  ;;  %v5866_v53 = vld [vmem:[%s7172_s0 + $0x1f0] sm:$0xff] }
  0x71   :  { %746 = vmatprep.mubr.bf16.mxu0 %v5503_v3  ;;  %195 = vmatprep.mubr.bf16.mxu1 %v5503_v3  ;;  %v68_v57 = vpack.c.bf16 %v5871_v54, %v5866_v53  ;;  %v5975_v45 = vld [vmem:[%s7172_s0 + $0x50] sm:$0xff]  ;;  %v1453_v6 = vpack.c.bf16 %v5866_v53, %v5849_v48 }
  0x72   :  { %v38_v50 = vpack.c.bf16 %v5975_v45, %v5970_v44 }
  0x78   :  { %4241 = vmatmul.mubr.msk.bf16.gmra.mrb[24].mxu0 %vm81_vm1, %v611_v56  ;;  %4192 = vmatmul.mubr.msk.bf16.gmra.mrb[20].mxu1 %vm81_vm1, %v67_v51  ;;  %v4256_v56 = vld [vmem:[%s7172_s0 + $0x440] sm:$0xff]  ;;  %v1450_v51 = vpack.c.bf16 %v5803_v35, %v5786_v26  ;;  %v1658_v26 = vpack.c.bf16 %v5562_v11, %v5544_v5  ;;  %v1659_v35 = vpack.c.bf16 %v5577_v15, %v5567_v12 }
  0x79   :  { %756 = vmatprep.mubr.bf16.mxu0 %v5503_v3  ;;  %205 = vmatprep.mubr.bf16.mxu1 %v5503_v3  ;;  %v822_v58 = vpack.c.bf16 %v4256_v56, %v4255_v55  ;;  %v5994_v55 = vld [vmem:[%s7172_s0 + $0x60] sm:$0xff]  ;;  %v5999_v56 = vld [vmem:[%s7172_s0 + $0x70] sm:$0xff] }
  0x7a   :  { %v39_v61 = vpack.c.bf16 %v5999_v56, %v5994_v55  ;;  %v4358_v5 = vld [vmem:[%s7172_s0 + $0x81] sm:$0xff] }
  0x7b   :  { %v1661_v12 = vpack.c.bf16 %v4358_v5, %v5596_v19  ;;  %v1663_v19 = vpack.c.bf16 %v5630_v27, %v5621_v25  ;;  %v4366_v25 = vld [vmem:[%s7172_s0 + $0x111] sm:$0xff] }
  0x7c   :  { %v5402_v5 = vld [vmem:[%s7174_s2 + $0x58] sm:$0xff]  }
  0x80   :  { %4242 = vmatmul.mubr.msk.bf16.gmra.mrb[28].mxu0 %vm81_vm1, %v612_v59  ;;  %4193 = vmatmul.mubr.msk.bf16.gmra.mrb[24].mxu1 %vm81_vm1, %v68_v57  ;;  %v5888_v59 = vld [vmem:[%s7172_s0 + $0x210] sm:$0xff]  ;;  %v4276_v57 = vld [vmem:[%s7172_s0 + $0x2a1] sm:$0xff] }
  0x81   :  { %897 = vmatprep.mubr.bf16.mxu0 %v5503_v3  ;;  %215 = vmatprep.mubr.bf16.mxu1 %v5503_v3  ;;  %v69_v63 = vpack.c.bf16 %v5893_v60, %v5888_v59  ;;  %v1662_v60 = vpack.c.bf16 %v5616_v24, %v5608_v22 }
  0x88   :  { %4262 = vmatmul.mubr.msk.bf16.vlgmr.msra.gmra.mrb[0].mxu0 %vm81_vm1, %v816_v7  ;;  %4194 = vmatmul.mubr.msk.bf16.gmra.mrb[28].mxu1 %vm81_vm1, %v69_v63  ;;  %v5913_v7 = vld [vmem:[%s7172_s0 + $0x10] sm:$0xff]  ;;  %v6016_v63 = vld [vmem:[%s7172_s0 + $0xa0] sm:$0xff] }
  0x89   :  { %1076 = vmatpush1.bf16.msra.mxu0 %v1070_v8  ;;  %907 = vmatprep.mubr.bf16.mxu0 %v5503_v3  ;;  %v260_v8 = vsel %vm106_vm0, %v4195_v2, 0  ;;  %v4278_v2 = vld [vmem:[%s7172_s0 + $0x2d1] sm:$0xff] }
  0x8a   :  { %4315 = vmatprep.subr.msk.bf16.mxu0 %vm106_vm0, %v1255_v9  ;;  %297 = vmatprep.mubr.bf16.mxu1 %v5503_v3  ;;  %v20_v9 = vld [vmem:[%s7172_s0] sm:$0xff]  ;;  %v1030_v10 = vpack.c.bf16 %v4279_v4, %v4278_v2  ;;  %v1237_v4 = vpack.c.bf16 %v5945_v37, %v5913_v7 }
  0x8b   :  { %v36_v20 = vpack.c.bf16 %v5913_v7, %v20_v9  ;;  %266 = vmatpush1.bf16.msra.mxu1 %v260_v8  ;;  %v1452_v9 = vpack.c.bf16 %v5844_v47, %v5828_v42  ;;  %v4368_v2 = vld.sshfl [vmem:[%s7173_s1 + $0x20] sm:$0x33 pattern:$0x76325410]  ;;  %v1239_v7 = vpack.c.bf16 %v5994_v55, %v5975_v45  ;;  %v4312_v55 = vld [vmem:[%s7172_s0 + $0x110] sm:$0xff] }
  0x90   :  { %4263 = vmatmul.mubr.msk.bf16.gmra.mrb[4].mxu0 %vm81_vm1, %v817_v21  ;;  %v1448_v21 = vpack.c.bf16 %v5765_v14, %v5733_v0  ;;  %4197 = vmatmul.mubr.msk.bf16.vlgmr.msra.gmra.mrb[0].mxu1 %vm81_vm1, %v36_v20  ;;  %v4307_v20 = vld [vmem:[%s7172_s0 + $0xc0] sm:$0xff] }
  0x91   :  { %917 = vmatprep.mubr.bf16.mxu0 %v5503_v3  ;;  %307 = vmatprep.mubr.bf16.mxu1 %v5503_v3  ;;  %v4331_v0 = vld [vmem:[%s7172_s0 + $0x1a0] sm:$0xff] }
  0x92   :  { %v1451_v14 = vpack.c.bf16 %v4331_v0, %v5808_v36  ;;  %v1660_v36 = vpack.c.bf16 %v5591_v18, %v5582_v16  ;;  %v5401_v0 = vld [vmem:[%s7174_s2 + $0x50] sm:$0xff]  }
  0x98   :  { %4264 = vmatmul.mubr.msk.bf16.gmra.mrb[8].mxu0 %vm81_vm1, %v818_v34  ;;  %v1466_v34 = vcombine.high %v5933_v29, %v5933_v29 }
  0x99   :  { %927 = vmatprep.mubr.bf16.mxu0 %v5503_v3 }
  0xa0   :  { %4265 = vmatmul.mubr.msk.bf16.gmra.mrb[12].mxu0 %vm81_vm1, %v819_v40  ;;  %v37_v40 = vpack.c.bf16 %v5950_v38, %v5945_v37 }
  0xa1   :  { %937 = vmatprep.mubr.bf16.mxu0 %v5503_v3 }
  0xa2   :  { %4198 = vmatmul.mubr.msk.bf16.gmra.mrb[4].mxu1 %vm81_vm1, %v37_v40  ;;  %v4308_v40 = vld [vmem:[%s7172_s0 + $0xd0] sm:$0xff] }
  0xa3   :  { %317 = vmatprep.mubr.bf16.mxu1 %v5503_v3 }
  0xa8   :  { %4266 = vmatmul.mubr.msk.bf16.gmra.mrb[16].mxu0 %vm81_vm1, %v820_v46  ;;  %v4274_v46 = vld [vmem:[%s7172_s0 + $0x281] sm:$0xff] }
  0xa9   :  { %947 = vmatprep.mubr.bf16.mxu0 %v5503_v3 }
  0xaa   :  { %4199 = vmatmul.mubr.msk.bf16.gmra.mrb[8].mxu1 %vm81_vm1, %v38_v50 }
  0xab   :  { %327 = vmatprep.mubr.bf16.mxu1 %v5503_v3 }
  0xb0   :  { %4267 = vmatmul.mubr.msk.bf16.gmra.mrb[20].mxu0 %vm81_vm1, %v821_v52  ;;  %v1028_v52 = vpack.c.bf16 %v4275_v49, %v4274_v46  ;;  %v4282_v46 = vld [vmem:[%s7172_s0 + $0x311] sm:$0xff]  ;;  %v4283_v49 = vld [vmem:[%s7172_s0 + $0x321] sm:$0xff] }
  0xb1   :  { %957 = vmatprep.mubr.bf16.mxu0 %v5503_v3 }
  0xb2   :  { %4200 = vmatmul.mubr.msk.bf16.gmra.mrb[12].mxu1 %vm81_vm1, %v39_v61  ;;  %v4311_v61 = vld [vmem:[%s7172_s0 + $0x100] sm:$0xff] }
  0xb3   :  { %337 = vmatprep.mubr.bf16.mxu1 %v5503_v3 }
  0xb8   :  { %4268 = vmatmul.mubr.msk.bf16.gmra.mrb[24].mxu0 %vm81_vm1, %v822_v58  ;;  %v4277_v58 = vld [vmem:[%s7172_s0 + $0x2b1] sm:$0xff] }
  0xb9   :  { %967 = vmatprep.mubr.bf16.mxu0 %v5503_v3  ;;  %v1029_v62 = vpack.c.bf16 %v4277_v58, %v4276_v57  ;;  %v1032_v57 = vpack.c.bf16 %v4283_v49, %v4282_v46  ;;  %v4310_v58 = vld [vmem:[%s7172_s0 + $0xf0] sm:$0xff] }
  0xc0   :  { %4269 = vmatmul.mubr.msk.bf16.gmra.mrb[28].mxu0 %vm81_vm1, %v823_v1  ;;  %v28_v1 = vld [vmem:[%s7172_s0 + $0x90] sm:$0xff] }
  0xc1   :  { %1107 = vmatprep.mubr.bf16.mxu0 %v5503_v3  ;;  %v40_v8 = vpack.c.bf16 %v6016_v63, %v28_v1 }
  0xc3   :  { %4201 = vmatmul.mubr.msk.bf16.gmra.mrb[16].mxu1 %vm81_vm1, %v40_v8  ;;  %v1492_v8 = vsel %vm106_vm0, %v5933_v29, 0  ;;  %v4304_v29 = vld [vmem:[%s7172_s0 + $0x80] sm:$0xff] }
  0xc4   :  { %347 = vmatprep.mubr.bf16.mxu1 %v5503_v3  ;;  %v1240_v37 = vpack.c.bf16 %v4304_v29, %v5999_v56  ;;  %v1244_v56 = vpack.c.bf16 %v4312_v55, %v4311_v61 }
  0xc8   :  { %4289 = vmatmul.mubr.msk.bf16.vlgmr.msra.gmra.mrb[0].mxu0 %vm81_vm1, %v1026_v32  ;;  %v4280_v32 = vld [vmem:[%s7172_s0 + $0x2f1] sm:$0xff] }
  0xc9   :  { %1287 = vmatpush1.bf16.msra.mxu0 %v1281_v33  ;;  %1117 = vmatprep.mubr.bf16.mxu0 %v5503_v3  ;;  %v4281_v33 = vld [vmem:[%s7172_s0 + $0x301] sm:$0xff] }
  0xca   :  { %4342 = vmatprep.subr.msk.bf16.mxu0 %vm106_vm0, %v1466_v34  ;;  %v41_v34 = vpack.c.bf16 %v4307_v20, %v4306_v13  ;;  %v1031_v39 = vpack.c.bf16 %v4281_v33, %v4280_v32  ;;  %v1238_v32 = vpack.c.bf16 %v5970_v44, %v5950_v38  ;;  %v1241_v38 = vpack.c.bf16 %v4306_v13, %v6016_v63 }
  0xcb   :  { %v1242_v44 = vpack.c.bf16 %v4308_v40, %v4307_v20  ;;  %v1702_v63 = vsel %vm106_vm0, %v4368_v2, 0  ;;  %v1664_v33 = vpack.c.bf16 %v5644_v30, %v5635_v28 }
  0xcc   :  { %4202 = vmatmul.mubr.msk.bf16.gmra.mrb[20].mxu1 %vm81_vm1, %v41_v34 }
  0xcd   :  { %357 = vmatprep.mubr.bf16.mxu1 %v5503_v3 }
  0xd0   :  { %4290 = vmatmul.mubr.msk.bf16.gmra.mrb[4].mxu0 %vm81_vm1, %v1027_v43  ;;  %v4309_v43 = vld [vmem:[%s7172_s0 + $0xe0] sm:$0xff] }
  0xd1   :  { %1127 = vmatprep.mubr.bf16.mxu0 %v5503_v3  ;;  %v42_v50 = vpack.c.bf16 %v4309_v43, %v4308_v40  ;;  %v1243_v45 = vpack.c.bf16 %v4310_v58, %v4309_v43  ;;  %v1665_v40 = vpack.c.bf16 %v4366_v25, %v5649_v31 }
  0xd4   :  { %4203 = vmatmul.mubr.msk.bf16.gmra.mrb[24].mxu1 %vm81_vm1, %v42_v50 }
  0xd5   :  { %367 = vmatprep.mubr.bf16.mxu1 %v5503_v3 }
  0xd8   :  { %4291 = vmatmul.mubr.msk.bf16.gmra.mrb[8].mxu0 %vm81_vm1, %v1028_v52  ;;  %v1454_v52 = vpack.c.bf16 %v5888_v59, %v5871_v54  ;;  %v4284_v54 = vld [vmem:[%s7172_s0 + $0x331] sm:$0xff]  ;;  %v4285_v59 = vld [vmem:[%s7172_s0 + $0x341] sm:$0xff] }
  0xd9   :  { %1137 = vmatprep.mubr.bf16.mxu0 %v5503_v3  ;;  %v1033_v1 = vpack.c.bf16 %v4285_v59, %v4284_v54 }
  0xe0   :  { %4292 = vmatmul.mubr.msk.bf16.gmra.mrb[12].mxu0 %vm81_vm1, %v1029_v62  ;;  %v43_v62 = vpack.c.bf16 %v4311_v61, %v4310_v58 }
  0xe1   :  { %1147 = vmatprep.mubr.bf16.mxu0 %v5503_v3 }
  0xe2   :  { %4204 = vmatmul.mubr.msk.bf16.gmra.mrb[28].mxu1 %vm81_vm1, %v43_v62 }
  0xe8   :  { %4293 = vmatmul.mubr.msk.bf16.gmra.mrb[16].mxu0 %vm81_vm1, %v1030_v10  ;;  %v1676_v10 = vcombine.high %v4368_v2, %v4368_v2 }
  0xe9   :  { %1157 = vmatprep.mubr.bf16.mxu0 %v5503_v3 }
  0xf0   :  { %4294 = vmatmul.mubr.msk.bf16.gmra.mrb[20].mxu0 %vm81_vm1, %v1031_v39 }
  0xf1   :  { %1167 = vmatprep.mubr.bf16.mxu0 %v5503_v3 }
  0xf8   :  { %4295 = vmatmul.mubr.msk.bf16.gmra.mrb[24].mxu0 %vm81_vm1, %v1032_v57 }
  0xf9   :  { %1177 = vmatprep.mubr.bf16.mxu0 %v5503_v3 }
 0x100   :  { %4296 = vmatmul.mubr.msk.bf16.gmra.mrb[28].mxu0 %vm81_vm1, %v1033_v1 }
 0x101   :  { %1318 = vmatprep.mubr.bf16.mxu0 %v5503_v3 }
 0x108   :  { %4316 = vmatmul.mubr.msk.bf16.vlgmr.msra.gmra.mrb[0].mxu0 %vm81_vm1, %v1237_v4 }
 0x109   :  { %1498 = vmatpush1.bf16.msra.mxu0 %v1492_v8  ;;  %1328 = vmatprep.mubr.bf16.mxu0 %v5503_v3 }
 0x10a   :  { %4369 = vmatprep.subr.msk.bf16.mxu0 %vm106_vm0, %v1676_v10 }
 0x110   :  { %4317 = vmatmul.mubr.msk.bf16.gmra.mrb[4].mxu0 %vm81_vm1, %v1238_v32  ;;  %v5399_v32 = vld [vmem:[%s7174_s2 + $0x40] sm:$0xff]  }
 0x111   :  { %1338 = vmatprep.mubr.bf16.mxu0 %v5503_v3  ;;  %4722 = vmatprep.subr.bf16.mxu1 %v5399_v32 }
 0x112   :  { %4723 = vmatpush3.bf16.msra.mxu1 %v5399_v32 }
 0x118   :  { %4318 = vmatmul.mubr.msk.bf16.gmra.mrb[8].mxu0 %vm81_vm1, %v1239_v7 }
 0x119   :  { %1348 = vmatprep.mubr.bf16.mxu0 %v5503_v3 }
 0x120   :  { %4319 = vmatmul.mubr.msk.bf16.gmra.mrb[12].mxu0 %vm81_vm1, %v1240_v37 }
 0x121   :  { %1358 = vmatprep.mubr.bf16.mxu0 %v5503_v3 }
 0x128   :  { %4320 = vmatmul.mubr.msk.bf16.gmra.mrb[16].mxu0 %vm81_vm1, %v1241_v38 }
 0x129   :  { %1368 = vmatprep.mubr.bf16.mxu0 %v5503_v3 }
 0x130   :  { %4321 = vmatmul.mubr.msk.bf16.gmra.mrb[20].mxu0 %vm81_vm1, %v1242_v44 }
 0x131   :  { %1378 = vmatprep.mubr.bf16.mxu0 %v5503_v3 }
 0x138   :  { %4322 = vmatmul.mubr.msk.bf16.gmra.mrb[24].mxu0 %vm81_vm1, %v1243_v45 }
 0x139   :  { %1388 = vmatprep.mubr.bf16.mxu0 %v5503_v3 }
 0x140   :  { %4323 = vmatmul.mubr.msk.bf16.gmra.mrb[28].mxu0 %vm81_vm1, %v1244_v56  ;;  %v5400_v56 = vld [vmem:[%s7174_s2 + $0x48] sm:$0xff]  }
 0x141   :  { %1529 = vmatprep.mubr.bf16.mxu0 %v5503_v3  ;;  %4724 = vmatprep.subr.bf16.mxu1 %v5400_v56 }
 0x142   :  { %4725 = vmatpush3.bf16.msra.mxu1 %v5400_v56 }
 0x143   :  { %4726 = vmatprep.subr.bf16.mxu1 %v5401_v0 }
 0x146   :  { %4727 = vmatpush3.bf16.msra.mxu1 %v5401_v0 }
 0x147   :  { %4728 = vmatprep.subr.bf16.mxu1 %v5402_v5 }
 0x148   :  { %4343 = vmatmul.mubr.msk.bf16.vlgmr.msra.gmra.mrb[0].mxu0 %vm81_vm1, %v1448_v21 }
 0x149   :  { %1708 = vmatpush1.bf16.msra.mxu0 %v1702_v63  ;;  %1539 = vmatprep.mubr.bf16.mxu0 %v5503_v3 }
 0x14a   :  { %4729 = vmatpush3.bf16.msra.mxu1 %v5402_v5 }
 0x150   :  { %4344 = vmatmul.mubr.msk.bf16.gmra.mrb[4].mxu0 %vm81_vm1, %v1449_v41 }
 0x151   :  { %1549 = vmatprep.mubr.bf16.mxu0 %v5503_v3 }
 0x158   :  { %4345 = vmatmul.mubr.msk.bf16.gmra.mrb[8].mxu0 %vm81_vm1, %v1450_v51 }
 0x159   :  { %1559 = vmatprep.mubr.bf16.mxu0 %v5503_v3 }
 0x160   :  { %4346 = vmatmul.mubr.msk.bf16.gmra.mrb[12].mxu0 %vm81_vm1, %v1451_v14 }
 0x161   :  { %1569 = vmatprep.mubr.bf16.mxu0 %v5503_v3 }
 0x163   :  { %v299_v42 = vpop.f32.mrb[0].mxu1 }
 0x164   :  { %v301_v11 = vpop.f32.mrb[1].mxu1 }
 0x165   :  { %v303_v47 = vpop.f32.mrb[2].mxu1 }
 0x166   :  { %v305_v48 = vpop.f32.mrb[3].mxu1 }
 0x168   :  { %4347 = vmatmul.mubr.msk.bf16.gmra.mrb[16].mxu0 %vm81_vm1, %v1452_v9 }
 0x169   :  { %1579 = vmatprep.mubr.bf16.mxu0 %v5503_v3 }
 0x170   :  { %4348 = vmatmul.mubr.msk.bf16.gmra.mrb[20].mxu0 %vm81_vm1, %v1453_v6 }
 0x171   :  { %1589 = vmatprep.mubr.bf16.mxu0 %v5503_v3 }
 0x175   :  { %v309_v15 = vpop.f32.mrb[4].mxu1 }
 0x176   :  { %v311_v16 = vpop.f32.mrb[5].mxu1 }
 0x177   :  { %v313_v18 = vpop.f32.mrb[6].mxu1 }
 0x178   :  { %4349 = vmatmul.mubr.msk.bf16.gmra.mrb[24].mxu0 %vm81_vm1, %v1454_v52  ;;  %v315_v53 = vpop.f32.mrb[7].mxu1 }
 0x179   :  { %1599 = vmatprep.mubr.bf16.mxu0 %v5503_v3 }
 0x17d   :  { %v319_v21 = vpop.f32.mrb[8].mxu1 }
 0x17e   :  { %v321_v41 = vpop.f32.mrb[9].mxu1 }
 0x17f   :  { %v323_v51 = vpop.f32.mrb[10].mxu1 }
 0x180   :  { %4350 = vmatmul.mubr.msk.bf16.gmra.mrb[28].mxu0 %vm81_vm1, %v1455_v23  ;;  %v6184_v9 = vpop.f32.mrb[11].mxu1 }
 0x181   :  { %1739 = vmatprep.mubr.bf16.mxu0 %v5503_v3 }
 0x185   :  { %v6189_v13 = vpop.f32.mrb[12].mxu1 }
 0x186   :  { %v6192_v20 = vpop.f32.mrb[13].mxu1 }
 0x187   :  { %v6194_v22 = vpop.f32.mrb[14].mxu1 }
 0x188   :  { %4370 = vmatmul.mubr.msk.bf16.vlgmr.msra.gmra.mrb[0].mxu0 %vm81_vm1, %v1658_v26  ;;  %v6196_v24 = vpop.f32.mrb[15].mxu1 }
 0x189   :  { %1749 = vmatprep.mubr.bf16.mxu0 %v5503_v3 }
 0x190   :  { %4371 = vmatmul.mubr.msk.bf16.gmra.mrb[4].mxu0 %vm81_vm1, %v1659_v35 }
 0x191   :  { %1759 = vmatprep.mubr.bf16.mxu0 %v5503_v3 }
 0x196   :  { %v6201_v34 = vpop.f32.mrb[16].mxu1 }
 0x197   :  { %v6207_v27 = vpop.f32.mrb[17].mxu1 }
 0x198   :  { %4372 = vmatmul.mubr.msk.bf16.gmra.mrb[8].mxu0 %vm81_vm1, %v1660_v36  ;;  %v6209_v6 = vpop.f32.mrb[18].mxu1 }
 0x199   :  { %1769 = vmatprep.mubr.bf16.mxu0 %v5503_v3  ;;  %v6211_v39 = vpop.f32.mrb[19].mxu1 }
 0x19f   :  { %v6215_v28 = vpop.f32.mrb[20].mxu1 }
 0x1a0   :  { %4373 = vmatmul.mubr.msk.bf16.gmra.mrb[12].mxu0 %vm81_vm1, %v1661_v12  ;;  %v6217_v30 = vpop.f32.mrb[21].mxu1  ;;  %v5403_v12 = vld [vmem:[%s7174_s2 + $0x60] sm:$0xff]  }
 0x1a1   :  { %1779 = vmatprep.mubr.bf16.mxu0 %v5503_v3  ;;  %v6219_v43 = vpop.f32.mrb[22].mxu1  ;;  %4730 = vmatprep.subr.bf16.mxu1 %v5403_v12 }
 0x1a2   :  { %4731 = vmatpush3.bf16.msra.mxu1 %v5403_v12 }
 0x1a8   :  { %4374 = vmatmul.mubr.msk.bf16.gmra.mrb[16].mxu0 %vm81_vm1, %v1662_v60 }
 0x1a9   :  { %1789 = vmatprep.mubr.bf16.mxu0 %v5503_v3 }
 0x1b0   :  { %4375 = vmatmul.mubr.msk.bf16.gmra.mrb[20].mxu0 %vm81_vm1, %v1663_v19  ;;  %v5404_v19 = vld [vmem:[%s7174_s2 + $0x68] sm:$0xff]  }
 0x1b1   :  { %1799 = vmatprep.mubr.bf16.mxu0 %v5503_v3  ;;  %4732 = vmatprep.subr.bf16.mxu1 %v5404_v19 }
 0x1b2   :  { %4733 = vmatpush3.bf16.msra.mxu1 %v5404_v19 }
 0x1b8   :  { %4376 = vmatmul.mubr.msk.bf16.gmra.mrb[24].mxu0 %vm81_vm1, %v1664_v33 }
 0x1b9   :  { %1809 = vmatprep.mubr.bf16.mxu0 %v5503_v3  ;;  %v6221_v3 = vpop.f32.mrb[23].mxu1 }
 0x1ba   :  { %v6223_v46 = vpop.f32.mrb[24].mxu1 }
 0x1bb   :  { %v6225_v49 = vpop.f32.mrb[25].mxu1 }
 0x1bc   :  { %v6227_v50 = vpop.f32.mrb[26].mxu1 }
 0x1bd   :  { %v6229_v52 = vpop.f32.mrb[27].mxu1 }
 0x1be   :  { %v6231_v57 = vpop.f32.mrb[28].mxu1 }
 0x1bf   :  { %v6233_v31 = vpop.f32.mrb[29].mxu1 }
 0x1c0   :  { %4377 = vmatmul.mubr.msk.bf16.gmra.mrb[28].mxu0 %vm81_vm1, %v1665_v40  ;;  %v6235_v58 = vpop.f32.mrb[30].mxu1 }
 0x1c1   :  { %v6237_v61 = vpop.f32.mrb[31].mxu1 }
 0x25b   :  { %v1741_v54 = vpop.f32.mrb[0].mxu0 }
 0x25c   :  { %v6239_v59 = vadd.f32 %v1741_v54, %v299_v42  ;;  %v1743_v62 = vpop.f32.mrb[1].mxu0 }
 0x25d   :  { %v6241_v1 = vadd.f32 %v1743_v62, %v301_v11  ;;  %v1745_v2 = vpop.f32.mrb[2].mxu0 }
 0x25e   :  { %v6243_v4 = vadd.f32 %v1745_v2, %v303_v47  ;;  %v1747_v8 = vpop.f32.mrb[3].mxu0 }
 0x25f   :  { %v6245_v10 = vadd.f32 %v1747_v8, %v305_v48 }
 0x260   :  { %v1852_v47 = vadd.f32 %v6243_v4, %v6239_v59 }
 0x261   :  { %7202 = vst [vmem:[#allocation6_spill] sm:$0xff] %v6245_v10  ;;  %v5432_v10 = vld [vmem:[%s7174_s2 + $0x108] sm:$0xff]  }
 0x263   :  { %v1751_v7 = vpop.f32.mrb[4].mxu0 }
 0x264   :  { %v6250_v29 = vadd.f32 %v1751_v7, %v309_v15  ;;  %v1753_v37 = vpop.f32.mrb[5].mxu0 }
 0x265   :  { %v6252_v38 = vadd.f32 %v1753_v37, %v311_v16  ;;  %v1755_v44 = vpop.f32.mrb[6].mxu0 }
 0x266   :  { %v6254_v45 = vadd.f32 %v1755_v44, %v313_v18  ;;  %v1757_v55 = vpop.f32.mrb[7].mxu0  ;;  %v1853_v48 = vadd.f32 %v6250_v29, %v1852_v47 }
 0x267   :  { %7203 = vst [vmem:[#allocation7_spill] sm:$0xff] %v6252_v38  ;;  %v6259_v63 = vadd.f32 %v1757_v55, %v315_v53 }
 0x269   :  { %7204 = vst [vmem:[#allocation8_spill] sm:$0xff] %v6259_v63  ;;  %v5430_v63 = vld [vmem:[%s7174_s2 + $0xf8] sm:$0xff]  }
 0x26b   :  { %v1761_v14 = vpop.f32.mrb[8].mxu0 }
 0x26c   :  { %v6264_v17 = vadd.f32 %v1761_v14, %v319_v21  ;;  %v1763_v23 = vpop.f32.mrb[9].mxu0  ;;  %v1854_v21 = vadd.f32 %v6254_v45, %v1853_v48 }
 0x26d   :  { %v6266_v26 = vadd.f32 %v1763_v23, %v321_v41  ;;  %v1765_v35 = vpop.f32.mrb[10].mxu0 }
 0x26e   :  { %v6268_v36 = vadd.f32 %v1765_v35, %v323_v51  ;;  %v1767_v42 = vpop.f32.mrb[11].mxu0 }
 0x26f   :  { %7205 = vst [vmem:[#allocation9_spill] sm:$0xff] %v6266_v26  ;;  %v6274_v11 = vadd.f32 %v1767_v42, %v6184_v9  ;;  %v5504_v9 = vmov 0.0   ;;  %v5428_v26 = vld [vmem:[%s7174_s2 + $0xe8] sm:$0xff]  }
 0x270   :  { %1993 = vst [vmem:[#allocation2] sm:$0xff] %v5504_v9  ;;  %1994 = vst [vmem:[#allocation2 + $0x8] sm:$0xff] %v5504_v9 }
 0x271   :  { %7206 = vst [vmem:[#allocation10_spill] sm:$0xff] %v6274_v11  ;;  %1995 = vst [vmem:[#allocation2 + $0x10] sm:$0x1] %v5504_v9 }
 0x272   :  { %1996 = vst [vmem:[#allocation2 + $0x18] sm:$0xff] %v5504_v9  ;;  %1998 = vst [vmem:[#allocation2 + $0x28] sm:$0x1] %v5504_v9 }
 0x273   :  { %v1771_v15 = vpop.f32.mrb[12].mxu0  ;;  %1999 = vst [vmem:[#allocation2 + $0x30] sm:$0xff] %v5504_v9  ;;  %2001 = vst [vmem:[#allocation2 + $0x40] sm:$0x1] %v5504_v9 }
 0x274   :  { %v6283_v16 = vadd.f32 %v1771_v15, %v6189_v13  ;;  %v1773_v18 = vpop.f32.mrb[13].mxu0  ;;  %2002 = vst [vmem:[#allocation2 + $0x48] sm:$0xff] %v5504_v9  ;;  %2004 = vst [vmem:[#allocation2 + $0x58] sm:$0x1] %v5504_v9 }
 0x275   :  { %v6286_v53 = vadd.f32 %v1773_v18, %v6192_v20  ;;  %v1775_v60 = vpop.f32.mrb[14].mxu0  ;;  %2005 = vst [vmem:[#allocation2 + $0x60] sm:$0xff] %v5504_v9  ;;  %2007 = vst [vmem:[#allocation2 + $0x70] sm:$0x1] %v5504_v9  ;;  %v1855_v20 = vadd.f32 %v6264_v17, %v1854_v21 }
 0x276   :  { %v6290_v41 = vadd.f32 %v1775_v60, %v6194_v22  ;;  %v1777_v51 = vpop.f32.mrb[15].mxu0  ;;  %2008 = vst [vmem:[#allocation2 + $0x78] sm:$0xff] %v5504_v9  ;;  %2010 = vst [vmem:[#allocation2 + $0x88] sm:$0x1] %v5504_v9  ;;  %v5405_v22 = vld [vmem:[%s7174_s2 + $0x70] sm:$0xff]  }
 0x277   :  { %7207 = vst [vmem:[#allocation11_spill] sm:$0xff] %v6286_v53  ;;  %2011 = vst [vmem:[#allocation2 + $0x90] sm:$0xff] %v5504_v9  ;;  %v6340_v13 = vadd.f32 %v1777_v51, %v6196_v24  ;;  %v1856_v25 = vadd.f32 %v6268_v36, %v1855_v20  ;;  %4734 = vmatprep.subr.bf16.mxu1 %v5405_v22  ;;  %v5406_v24 = vld [vmem:[%s7174_s2 + $0x78] sm:$0xff]  }
 0x278   :  { %2013 = vst [vmem:[#allocation2 + $0xa0] sm:$0x1] %v5504_v9  ;;  %2014 = vst [vmem:[#allocation2 + $0xa8] sm:$0xff] %v5504_v9  ;;  %4735 = vmatpush3.bf16.msra.mxu1 %v5405_v22  ;;  %v5426_v53 = vld [vmem:[%s7174_s2 + $0xd8] sm:$0xff]  }
 0x279   :  { %2016 = vst [vmem:[#allocation2 + $0xb8] sm:$0x1] %v5504_v9  ;;  %2017 = vst [vmem:[#allocation2 + $0xc0] sm:$0xff] %v5504_v9  ;;  %v1857_v8 = vadd.f32 %v6283_v16, %v1856_v25  ;;  %4736 = vmatprep.subr.bf16.mxu1 %v5406_v24 }
 0x27a   :  { %2019 = vst [vmem:[#allocation2 + $0xd0] sm:$0x1] %v5504_v9  ;;  %2020 = vst [vmem:[#allocation2 + $0xd8] sm:$0xff] %v5504_v9 }
 0x27b   :  { %2021 = vst [vmem:[#allocation2 + $0xe0] sm:$0xff] %v5504_v9  ;;  %2022 = vst [vmem:[#allocation2 + $0xe8] sm:$0x1] %v5504_v9  ;;  %v1781_v33 = vpop.f32.mrb[16].mxu0 }
 0x27c   :  { %2023 = vst [vmem:[#allocation2 + $0xf0] sm:$0xff] %v5504_v9  ;;  %2024 = vst [vmem:[#allocation2 + $0xf8] sm:$0xff] %v5504_v9  ;;  %v6348_v40 = vadd.f32 %v1781_v33, %v6201_v34  ;;  %v1783_v54 = vpop.f32.mrb[17].mxu0  ;;  %v6363_v34 = vld [vmem:[%s7174_s2] sm:$0xff]   ;;  %4737 = vmatpush3.bf16.msra.mxu1 %v5406_v24 }
 0x27d   :  { %2025 = vst [vmem:[#allocation2 + $0x100] sm:$0x1] %v5504_v9  ;;  %2026 = vst [vmem:[#allocation2 + $0x108] sm:$0xff] %v5504_v9  ;;  %v6354_v62 = vadd.f32 %v1783_v54, %v6207_v27  ;;  %v1785_v2 = vpop.f32.mrb[18].mxu0  ;;  %v1858_v27 = vadd.f32 %v6290_v41, %v1857_v8  ;;  %4754 = vmatprep.subr.bf16.mxu1 %v6363_v34 }
 0x27e   :  { %2028 = vst [vmem:[#allocation2 + $0x118] sm:$0x1] %v5504_v9  ;;  %2029 = vst [vmem:[#allocation2 + $0x120] sm:$0xff] %v5504_v9  ;;  %v6358_v32 = vadd.f32 %v1785_v2, %v6209_v6  ;;  %v1787_v7 = vpop.f32.mrb[19].mxu0 }
 0x27f   :  { %2031 = vst [vmem:[#allocation2 + $0x130] sm:$0x1] %v5504_v9  ;;  %2032 = vst [vmem:[#allocation2 + $0x138] sm:$0xff] %v5504_v9  ;;  %v6366_v37 = vadd.f32 %v1787_v7, %v6211_v39  ;;  %v1859_v55 = vadd.f32 %v6348_v40, %v1858_v27 }
 0x280   :  { %2034 = vst [vmem:[#allocation2 + $0x148] sm:$0x1] %v5504_v9  ;;  %2035 = vst [vmem:[#allocation2 + $0x150] sm:$0xff] %v5504_v9 }
 0x281   :  { %2037 = vst [vmem:[#allocation2 + $0x160] sm:$0x1] %v5504_v9  ;;  %2038 = vst [vmem:[#allocation2 + $0x168] sm:$0xff] %v5504_v9  ;;  %v1860_v42 = vadd.f32 %v6358_v32, %v1859_v55 }
 0x282   :  { %2040 = vst [vmem:[#allocation2 + $0x178] sm:$0x1] %v5504_v9  ;;  %2041 = vst [vmem:[#allocation2 + $0x180] sm:$0xff] %v5504_v9 }
 0x283   :  { %2043 = vst [vmem:[#allocation2 + $0x190] sm:$0x1] %v5504_v9  ;;  %2044 = vst [vmem:[#allocation2 + $0x198] sm:$0xff] %v5504_v9  ;;  %v1791_v44 = vpop.f32.mrb[20].mxu0 }
 0x284   :  { %2046 = vst [vmem:[#allocation2 + $0x1a8] sm:$0x1] %v5504_v9  ;;  %2047 = vst [vmem:[#allocation2 + $0x1b0] sm:$0xff] %v5504_v9  ;;  %v6372_v6 = vadd.f32 %v1791_v44, %v6215_v28  ;;  %v1793_v56 = vpop.f32.mrb[21].mxu0 }
 0x285   :  { %2049 = vst [vmem:[#allocation2 + $0x1c0] sm:$0x1] %v5504_v9  ;;  %2050 = vst [vmem:[#allocation2 + $0x1c8] sm:$0xff] %v5504_v9  ;;  %v6375_v0 = vadd.f32 %v1793_v56, %v6217_v30  ;;  %v1795_v14 = vpop.f32.mrb[22].mxu0 }
 0x286   :  { %2051 = vst [vmem:[#allocation2 + $0x1d0] sm:$0xff] %v5504_v9  ;;  %2052 = vst [vmem:[#allocation2 + $0x1d8] sm:$0x1] %v5504_v9  ;;  %v6378_v23 = vadd.f32 %v1795_v14, %v6219_v43  ;;  %v1797_v39 = vpop.f32.mrb[23].mxu0  ;;  %v1861_v5 = vadd.f32 %v6372_v6, %v1860_v42 }
 0x287   :  { %7208 = vst [vmem:[#allocation12_spill] sm:$0xff] %v6340_v13  ;;  %7209 = vst [vmem:[#allocation13_spill] sm:$0xff] %v6354_v62  ;;  %v6381_v35 = vadd.f32 %v1797_v39, %v6221_v3  ;;  %v5424_v62 = vld [vmem:[%s7174_s2 + $0xc8] sm:$0xff]  }
 0x288   :  { %7210 = vst [vmem:[#allocation14_spill] sm:$0xff] %v6366_v37  ;;  %7211 = vst [vmem:[#allocation15_spill] sm:$0xff] %v6375_v0  ;;  %v1862_v43 = vadd.f32 %v6378_v23, %v1861_v5 }
 0x289   :  { %7212 = vst [vmem:[#allocation16_spill] sm:$0xff] %v6381_v35 }
 0x28b   :  { %v1801_v47 = vpop.f32.mrb[24].mxu0 }
 0x28c   :  { %v6386_v28 = vadd.f32 %v1801_v47, %v6223_v46  ;;  %v1803_v48 = vpop.f32.mrb[25].mxu0 }
 0x28d   :  { %v6389_v30 = vadd.f32 %v1803_v48, %v6225_v49  ;;  %v1805_v12 = vpop.f32.mrb[26].mxu0 }
 0x28e   :  { %v6393_v15 = vadd.f32 %v1805_v12, %v6227_v50  ;;  %v1807_v3 = vpop.f32.mrb[27].mxu0  ;;  %v1863_v60 = vadd.f32 %v6386_v28, %v1862_v43 }
 0x28f   :  { %7213 = vst [vmem:[#allocation17_spill] sm:$0xff] %v6389_v30  ;;  %v6396_v18 = vadd.f32 %v1807_v3, %v6229_v52  ;;  %v2441_v30 = vld [vmem:[#allocation2 + $0x9] sm:$0xff] }
 0x290   :  { %v1864_v46 = vadd.f32 %v6393_v15, %v1863_v60 }
 0x291   :  { %7214 = vst [vmem:[#allocation18_spill] sm:$0xff] %v6396_v18 }
 0x293   :  { %v1811_v21 = vpop.f32.mrb[28].mxu0 }
 0x294   :  { %v6401_v51 = vadd.f32 %v1811_v21, %v6231_v57  ;;  %v1813_v49 = vpop.f32.mrb[29].mxu0 }
 0x295   :  { %v6404_v19 = vadd.f32 %v1813_v49, %v6233_v31  ;;  %v1815_v20 = vpop.f32.mrb[30].mxu0 }
 0x296   :  { %v1865_v50 = vadd.f32 %v6401_v51, %v1864_v46  ;;  %v6408_v22 = vadd.f32 %v1815_v20, %v6235_v58  ;;  %v1817_v52 = vpop.f32.mrb[31].mxu0 }
 0x297   :  { %7215 = vst [vmem:[#allocation19_spill] sm:$0xff] %v6404_v19  ;;  %v6411_v33 = vadd.f32 %v1817_v52, %v6237_v61 }
 0x298   :  { %v1866_v25 = vadd.f32 %v6408_v22, %v1865_v50 }
 0x299   :  { %7216 = vst [vmem:[#allocation20_spill] sm:$0xff] %v6411_v33 }
 0x29a   :  { %v1867_v54 = vrot.slane %v1866_v25, 4 }
 0x29c   :  { %v1868_v24 = vadd.f32 %v1867_v54, %v1866_v25 }
 0x29e   :  { %v1869_v57 = vrot.slane %v1868_v24, 2 }
 0x2a0   :  { %v1870_v2 = vadd.f32 %v1869_v57, %v1868_v24 }
 0x2a2   :  { %v1871_v8 = vrot.slane %v1870_v2, 1 }
 0x2a4   :  { %v1872_v7 = vadd.f32 %v1871_v8, %v1870_v2 }
 0x2a6   :  { %v6414_v31 = vmul.f32 0.0078125, %v1872_v7 }
 0x2a8   :  { %v1875_v27 = vsub.f32 %v6239_v59, %v6414_v31  ;;  %v1876_v58 = vsub.f32 %v6243_v4, %v6414_v31  ;;  %v1877_v61 = vsub.f32 %v6250_v29, %v6414_v31  ;;  %v1878_v56 = vsub.f32 %v6254_v45, %v6414_v31 }
 0x2a9   :  { %v1879_v14 = vsub.f32 %v6264_v17, %v6414_v31  ;;  %v1880_v5 = vsub.f32 %v6268_v36, %v6414_v31  ;;  %v1881_v12 = vsub.f32 %v6283_v16, %v6414_v31  ;;  %v1882_v60 = vsub.f32 %v6290_v41, %v6414_v31 }
 0x2aa   :  { %v1891_v44 = vmul.f32 %v1875_v27, %v1875_v27  ;;  %v1892_v55 = vmul.f32 %v1876_v58, %v1876_v58  ;;  %v1893_v39 = vmul.f32 %v1877_v61, %v1877_v61  ;;  %v1894_v47 = vmul.f32 %v1878_v56, %v1878_v56 }
 0x2ab   :  { %v1895_v43 = vmul.f32 %v1879_v14, %v1879_v14  ;;  %v1896_v21 = vmul.f32 %v1880_v5, %v1880_v5  ;;  %v1883_v49 = vsub.f32 %v6348_v40, %v6414_v31  ;;  %v1897_v20 = vmul.f32 %v1881_v12, %v1881_v12 }
 0x2ac   :  { %v1907_v42 = vadd.f32 %v1892_v55, %v1891_v44  ;;  %v1884_v52 = vsub.f32 %v6358_v32, %v6414_v31  ;;  %v1898_v25 = vmul.f32 %v1882_v60, %v1882_v60  ;;  %v1885_v24 = vsub.f32 %v6372_v6, %v6414_v31 }
 0x2ad   :  { %v1899_v57 = vmul.f32 %v1883_v49, %v1883_v49  ;;  %v1886_v8 = vsub.f32 %v6378_v23, %v6414_v31  ;;  %v1887_v58 = vsub.f32 %v6386_v28, %v6414_v31  ;;  %v1888_v55 = vsub.f32 %v6393_v15, %v6414_v31 }
 0x2ae   :  { %v1908_v48 = vadd.f32 %v1907_v42, %v1893_v39  ;;  %v1900_v7 = vmul.f32 %v1884_v52, %v1884_v52  ;;  %v1901_v61 = vmul.f32 %v1885_v24, %v1885_v24  ;;  %v1889_v39 = vsub.f32 %v6401_v51, %v6414_v31 }
 0x2af   :  { %v1902_v56 = vmul.f32 %v1886_v8, %v1886_v8  ;;  %v1903_v42 = vmul.f32 %v1887_v58, %v1887_v58 }
 0x2b0   :  { %v1909_v3 = vadd.f32 %v1908_v48, %v1894_v47  ;;  %v1890_v47 = vsub.f32 %v6408_v22, %v6414_v31  ;;  %v1904_v48 = vmul.f32 %v1888_v55, %v1888_v55 }
 0x2b2   :  { %v1910_v46 = vadd.f32 %v1909_v3, %v1895_v43  ;;  %v1905_v43 = vmul.f32 %v1889_v39, %v1889_v39  ;;  %v1906_v60 = vmul.f32 %v1890_v47, %v1890_v47 }
 0x2b4   :  { %v1911_v50 = vadd.f32 %v1910_v46, %v1896_v21 }
 0x2b6   :  { %v1912_v54 = vadd.f32 %v1911_v50, %v1897_v20 }
 0x2b8   :  { %v1913_v2 = vadd.f32 %v1912_v54, %v1898_v25 }
 0x2ba   :  { %v1914_v27 = vadd.f32 %v1913_v2, %v1899_v57  ;;  %v1932_v2 = vlaneseq }
 0x2bc   :  { %v1915_v44 = vadd.f32 %v1914_v27, %v1900_v7  ;;  %v6448_v8 = vshrl.u32 %v1932_v2, 7  ;;  %v19_v7 = vld [vmem:[%s7175_s3] sm:$0x3f] }
 0x2be   :  { %v1916_v14 = vadd.f32 %v1915_v44, %v1901_v61  ;;  %7217 = vst [vmem:[#allocation21_spill] sm:$0xff] %v6448_v8  ;;  %v1934_v58 = vsub.s32 0, %v6448_v8 }
 0x2c0   :  { %v1917_v5 = vadd.f32 %v1916_v14, %v1902_v56  ;;  %v1959_v14 = vsub.s32 1, %v6448_v8 }
 0x2c2   :  { %v1918_v12 = vadd.f32 %v1917_v5, %v1903_v42 }
 0x2c4   :  { %v1919_v3 = vadd.f32 %v1918_v12, %v1904_v48 }
 0x2c6   :  { %v1920_v21 = vadd.f32 %v1919_v3, %v1905_v43 }
 0x2c8   :  { %v1921_v46 = vadd.f32 %v1920_v21, %v1906_v60 }
 0x2ca   :  { %v1922_v49 = vrot.slane %v1921_v46, 4 }
 0x2cc   :  { %v1923_v20 = vadd.f32 %v1922_v49, %v1921_v46 }
 0x2ce   :  { %v1924_v50 = vrot.slane %v1923_v20, 2 }
 0x2d0   :  { %v1925_v52 = vadd.f32 %v1924_v50, %v1923_v20 }
 0x2d2   :  { %v1926_v25 = vrot.slane %v1925_v52, 1 }
 0x2d4   :  { %v1927_v54 = vadd.f32 %v1926_v25, %v1925_v52 }
 0x2d6   :  { %v1928_v24 = vmul.f32 0.0078125, %v1927_v54 }
 0x2d8   :  { %v1929_v57 = vadd.f32 1e-05, %v1928_v24 }
 0x2da   :  { %5471 = vrsqrt.f32 %v1929_v57 }
 0x2e4   :  { %v5472_v27 = vpop.eup %5471 }
 0x2e5   :  { %v1931_v61 = vmul.f32 %v5472_v27, %v19_v7 }
 0x2e7   :  { %v1952_v44 = vmul.f32 %v1931_v61, %v6414_v31  ;;  %v1935_v55 = vrot.slane %v1931_v61, %v1934_v58 }
 0x2e9   :  { %v1954_v56 = vrot.slane %v1952_v44, 7  ;;  %v1951_v42 = vmul.f32 %v6408_v22, %v1935_v55  ;;  %v1936_v5 = vmul.f32 %v6239_v59, %v1935_v55  ;;  %v1937_v48 = vmul.f32 %v6243_v4, %v1935_v55 }
 0x2ea   :  { %v1938_v12 = vmul.f32 %v6250_v29, %v1935_v55  ;;  %v1939_v43 = vmul.f32 %v6254_v45, %v1935_v55  ;;  %v1940_v3 = vmul.f32 %v6264_v17, %v1935_v55  ;;  %v1941_v31 = vmul.f32 %v6268_v36, %v1935_v55 }
 0x2eb   :  { %v1956_v39 = vsub.f32 %v19_v7, %v1954_v56  ;;  %v1942_v60 = vmul.f32 %v6283_v16, %v1935_v55  ;;  %v1944_v21 = vmul.f32 %v6348_v40, %v1935_v55  ;;  %v1945_v17 = vmul.f32 %v6358_v32, %v1935_v55 }
 0x2ec   :  { %v1946_v36 = vmul.f32 %v6372_v6, %v1935_v55  ;;  %v1947_v25 = vmul.f32 %v6378_v23, %v1935_v55  ;;  %v1948_v54 = vmul.f32 %v6386_v28, %v1935_v55  ;;  %v5408_v28 = vld [vmem:[%s7174_s2 + $0x8] sm:$0xff]   ;;  %v1949_v27 = vmul.f32 %v6393_v15, %v1935_v55 }
 0x2ed   :  { %v6458_v47 = vrot.slane %v1956_v39, %v1959_v14 }
 0x2ef   :  { %v1976_v22 = vadd.f32 %v6458_v47, %v1951_v42  ;;  %v1961_v59 = vadd.f32 %v6458_v47, %v1936_v5  ;;  %v1962_v46 = vadd.f32 %v6458_v47, %v1937_v48  ;;  %v1963_v4 = vadd.f32 %v6458_v47, %v1938_v12 }
 0x2f0   :  { %v1964_v29 = vadd.f32 %v6458_v47, %v1939_v43  ;;  %v1965_v45 = vadd.f32 %v6458_v47, %v1940_v3  ;;  %v1966_v24 = vadd.f32 %v6458_v47, %v1941_v31  ;;  %v1967_v57 = vadd.f32 %v6458_v47, %v1942_v60 }
 0x2f1   :  { %v1992_v49 = vmax.f32 %v1976_v22, 0.0  ;;  %v6475_v16 = vmax.f32 %v1961_v59, 0.0  ;;  %v6477_v40 = vmax.f32 %v1962_v46, 0.0  ;;  %v6479_v20 = vmax.f32 %v1963_v4, 0.0  ;;  %v5410_v59 = vld [vmem:[%s7174_s2 + $0x18] sm:$0xff]  }
 0x2f2   :  { %v6481_v50 = vmax.f32 %v1964_v29, 0.0  ;;  %v6483_v52 = vmax.f32 %v1965_v45, 0.0  ;;  %v1969_v2 = vadd.f32 %v6458_v47, %v1944_v21  ;;  %v1970_v7 = vadd.f32 %v6458_v47, %v1945_v17 }
 0x2f3   :  { %2069 = vst [vmem:[#allocation2 + $0x1b8] sm:$0xff] %v1992_v49  ;;  %2054 = vst [vmem:[#allocation2 + $0x20] sm:$0xff] %v6475_v16  ;;  %v2126_v32 = vpack.c.bf16 %v6475_v16, %v5504_v9  ;;  %v2127_v6 = vpack.c.bf16 %v6479_v20, %v6477_v40  ;;  %v6506_v58 = vmax.f32 %v1966_v24, 0.0  ;;  %v6508_v61 = vmax.f32 %v1967_v57, 0.0 }
 0x2f4   :  { %2055 = vst [vmem:[#allocation2 + $0x38] sm:$0xff] %v6477_v40  ;;  %2056 = vst [vmem:[#allocation2 + $0x50] sm:$0xff] %v6479_v20  ;;  %v2128_v23 = vpack.c.bf16 %v6483_v52, %v6481_v50  ;;  %v1971_v44 = vadd.f32 %v6458_v47, %v1946_v36  ;;  %v1972_v56 = vadd.f32 %v6458_v47, %v1947_v25  ;;  %v6512_v14 = vmax.f32 %v1969_v2, 0.0 }
 0x2f5   :  { %2057 = vst [vmem:[#allocation2 + $0x68] sm:$0xff] %v6481_v50  ;;  %2058 = vst [vmem:[#allocation2 + $0x80] sm:$0xff] %v6483_v52  ;;  %4738 = vmatprep.mubr.bf16.mxu1 %v2126_v32  ;;  %v6514_v39 = vmax.f32 %v1970_v7, 0.0  ;;  %v1973_v42 = vadd.f32 %v6458_v47, %v1948_v54  ;;  %v1950_v5 = vmul.f32 %v6401_v51, %v1935_v55  ;;  %v5409_v51 = vld [vmem:[%s7174_s2 + $0x10] sm:$0xff]  }
 0x2f6   :  { %4739 = vmatmul.mubr.bf16.vlgmr.msra.gmra.mrb[32].mxu1 %v2127_v6  ;;  %2059 = vst [vmem:[#allocation2 + $0x98] sm:$0xff] %v6506_v58  ;;  %2060 = vst [vmem:[#allocation2 + $0xb0] sm:$0xff] %v6508_v61  ;;  %v6521_v15 = vmax.f32 %v1971_v44, 0.0  ;;  %v6523_v48 = vmax.f32 %v1972_v56, 0.0  ;;  %v1974_v12 = vadd.f32 %v6458_v47, %v1949_v27  ;;  %v1943_v43 = vmul.f32 %v6290_v41, %v1935_v55  ;;  %v2078_v32 = vld [vmem:[#allocation2 + $0xf7] sm:$0xff] }
 0x2f7   :  { %4742 = vmatprep.mubr.bf16.mxu1 %v2128_v23  ;;  %4755 = vmatpush3.bf16.msra.mxu1 %v6363_v34  ;;  %2062 = vst [vmem:[#allocation2 + $0x110] sm:$0xff] %v6512_v14  ;;  %2063 = vst [vmem:[#allocation2 + $0x128] sm:$0xff] %v6514_v39  ;;  %v6532_v34 = vmax.f32 %v1973_v42, 0.0  ;;  %v1975_v3 = vadd.f32 %v6458_v47, %v1950_v5  ;;  %v2129_v4 = vpack.c.bf16 %v6508_v61, %v6506_v58  ;;  %v5411_v23 = vld [vmem:[%s7174_s2 + $0x20] sm:$0xff]  }
 0x2f8   :  { %4756 = vmatprep.subr.bf16.mxu1 %v5408_v28  ;;  %2064 = vst [vmem:[#allocation2 + $0x140] sm:$0xff] %v6521_v15  ;;  %2065 = vst [vmem:[#allocation2 + $0x158] sm:$0xff] %v6523_v48  ;;  %v6537_v31 = vmax.f32 %v1974_v12, 0.0  ;;  %v1968_v41 = vadd.f32 %v6458_v47, %v1943_v43  ;;  %v2130_v36 = vpack.c.bf16 %v6512_v14, %v5504_v9 }
 0x2f9   :  { %2066 = vst [vmem:[#allocation2 + $0x170] sm:$0xff] %v6532_v34  ;;  %v6543_v60 = vmax.f32 %v1975_v3, 0.0  ;;  %v2131_v43 = vpack.c.bf16 %v6521_v15, %v6514_v39 }
 0x2fa   :  { %2067 = vst [vmem:[#allocation2 + $0x188] sm:$0xff] %v6537_v31  ;;  %v6553_v47 = vld [vmem:[#allocation2 + $0x21] sm:$0xff]  ;;  %v6555_v46 = vmax.f32 %v1968_v41, 0.0  ;;  %v6615_v41 = vpack.c.bf16 %v6532_v34, %v6523_v48 }
 0x2fb   :  { %4757 = vmatpush3.bf16.msra.mxu1 %v5408_v28  ;;  %2068 = vst [vmem:[#allocation2 + $0x1a0] sm:$0xff] %v6543_v60  ;;  %v6560_v29 = vld [vmem:[#allocation2 + $0x39] sm:$0xff]  ;;  %v6562_v45 = vld [vmem:[#allocation2 + $0x51] sm:$0xff]  ;;  %v6625_v3 = vpack.c.bf16 %v6543_v60, %v6537_v31  ;;  %v2457_v0 = vpack.c.bf16 %v6553_v47, %v2441_v30 }
 0x2fc   :  { %4758 = vmatprep.subr.bf16.mxu1 %v5409_v51  ;;  %v6564_v17 = vld [vmem:[#allocation2 + $0x69] sm:$0xff]  ;;  %v6568_v49 = vld [vmem:[#allocation2 + $0x81] sm:$0xff]  ;;  %2061 = vst [vmem:[#allocation2 + $0xc8] sm:$0xff] %v6555_v46  ;;  %v6635_v12 = vld [vmem:[#allocation2 + $0x37] sm:$0xff]  ;;  %v6719_v37 = vpack.c.bf16 %v6562_v45, %v6560_v29 }
 0x2fd   :  { %v6577_v6 = vld [vmem:[#allocation2 + $0x99] sm:$0xff]  ;;  %v6637_v42 = vld [vmem:[#allocation2 + $0x4f] sm:$0xff]  ;;  %v6639_v2 = vld [vmem:[#allocation2 + $0x67] sm:$0xff]  ;;  %v6726_v30 = vpack.c.bf16 %v6568_v49, %v6564_v17 }
 0x2fe   :  { %4743 = vmatmul.mubr.bf16.gmra.mrb[36].mxu1 %v2129_v4  ;;  %v6588_v28 = vld [vmem:[#allocation2 + $0x111] sm:$0xff]  ;;  %v6592_v7 = vld [vmem:[#allocation2 + $0x129] sm:$0xff]  ;;  %v6641_v57 = vld [vmem:[#allocation2 + $0x7f] sm:$0xff]  ;;  %v2660_v38 = vpack.c.bf16 %v6639_v2, %v6637_v42 }
 0x2ff   :  { %4746 = vmatprep.mubr.bf16.mxu1 %v2130_v36  ;;  %4759 = vmatpush3.bf16.msra.mxu1 %v5409_v51  ;;  %v6594_v27 = vld [vmem:[#allocation2 + $0x141] sm:$0xff]  ;;  %v6596_v44 = vld [vmem:[#allocation2 + $0x159] sm:$0xff]  ;;  %v6661_v24 = vld [vmem:[#allocation2 + $0xaf] sm:$0xff] }
 0x300   :  { %4760 = vmatprep.subr.bf16.mxu1 %v5410_v59  ;;  %v6598_v56 = vld [vmem:[#allocation2 + $0x171] sm:$0xff]  ;;  %v5412_v51 = vld [vmem:[%s7174_s2 + $0x28] sm:$0xff]   ;;  %v6621_v36 = vld [vmem:[#allocation2 + $0x1f] sm:$0xff]  ;;  %v6749_v11 = vpack.c.bf16 %v6594_v27, %v6592_v7 }
 0x301   :  { %v6602_v5 = vld [vmem:[#allocation2 + $0x189] sm:$0xff]  ;;  %v6659_v9 = vld [vmem:[#allocation2 + $0x97] sm:$0xff]  ;;  %v6679_v55 = vld [vmem:[#allocation2 + $0x13f] sm:$0xff] }
 0x302   :  { %v2070_v4 = vld [vmem:[#allocation2 + $0x7] sm:$0xff]  ;;  %v6663_v54 = vld [vmem:[#allocation2 + $0x10f] sm:$0xff]  ;;  %v6667_v25 = vpack.c.bf16 %v6661_v24, %v6659_v9  ;;  %v6681_v8 = vld [vmem:[#allocation2 + $0x157] sm:$0xff] }
 0x303   :  { %4761 = vmatpush3.bf16.msra.mxu1 %v5410_v59  ;;  %v5413_v59 = vld [vmem:[%s7174_s2 + $0x30] sm:$0xff]   ;;  %v2090_v22 = vpack.c.bf16 %v6663_v54, %v2078_v32  ;;  %v6677_v21 = vld [vmem:[#allocation2 + $0x127] sm:$0xff]  ;;  %v6703_v18 = vld [vmem:[#allocation2 + $0x19f] sm:$0xff] }
 0x304   :  { %4762 = vmatprep.subr.bf16.mxu1 %v5411_v23  ;;  %v6683_v33 = vld [vmem:[#allocation2 + $0x16f] sm:$0xff]  ;;  %v6687_v32 = vpack.c.bf16 %v6679_v55, %v6677_v21  ;;  %v6701_v19 = vld [vmem:[#allocation2 + $0x187] sm:$0xff] }
 0x305   :  { %v6707_v35 = vpack.c.bf16 %v6703_v18, %v6701_v19 }
 0x306   :  { %4747 = vmatmul.mubr.bf16.gmra.mrb[40].mxu1 %v2131_v43  ;;  %v5414_v43 = vld [vmem:[%s7174_s2 + $0x38] sm:$0xff]  }
 0x307   :  { %4750 = vmatprep.mubr.bf16.mxu1 %v6615_v41  ;;  %4763 = vmatpush3.bf16.msra.mxu1 %v5411_v23  ;;  %v2086_v23 = vpack.c.bf16 %v6621_v36, %v2070_v4  ;;  %v6645_v4 = vpack.c.bf16 %v6637_v42, %v6635_v12  ;;  %v5434_v42 = vld [vmem:[%s7174_s2 + $0x118] sm:$0xff]  }
 0x308   :  { %4764 = vmatprep.subr.bf16.mxu1 %v5412_v51 }
 0x30b   :  { %4765 = vmatpush3.bf16.msra.mxu1 %v5412_v51  ;;  %v5415_v51 = vld [vmem:[%s7174_s2 + $0x80] sm:$0xff]  }
 0x30c   :  { %4766 = vmatprep.subr.bf16.mxu1 %v5413_v59 }
 0x30e   :  { %4751 = vmatmul.mubr.bf16.gmra.mrb[44].mxu1 %v6625_v3 }
 0x30f   :  { %4767 = vmatpush3.bf16.msra.mxu1 %v5413_v59  ;;  %4770 = vmatprep.mubr.bf16.mxu1 %v2086_v23  ;;  %v5416_v59 = vld [vmem:[%s7174_s2 + $0x88] sm:$0xff]   ;;  %v6652_v23 = vpack.c.bf16 %v6641_v57, %v6639_v2 }
 0x310   :  { %4768 = vmatprep.subr.bf16.mxu1 %v5414_v43 }
 0x313   :  { %4769 = vmatpush3.bf16.msra.mxu1 %v5414_v43  ;;  %v5417_v43 = vld [vmem:[%s7174_s2 + $0x90] sm:$0xff]  }
 0x314   :  { %4786 = vmatprep.subr.bf16.mxu1 %v5415_v51 }
 0x316   :  { %4771 = vmatmul.mubr.bf16.vlgmr.msra.gmra.mrb[32].mxu1 %v6645_v4 }
 0x317   :  { %4774 = vmatprep.mubr.bf16.mxu1 %v6652_v23  ;;  %4787 = vmatpush3.bf16.msra.mxu1 %v5415_v51  ;;  %v5418_v51 = vld [vmem:[%s7174_s2 + $0x98] sm:$0xff]  }
 0x318   :  { %4788 = vmatprep.subr.bf16.mxu1 %v5416_v59 }
 0x31b   :  { %4789 = vmatpush3.bf16.msra.mxu1 %v5416_v59  ;;  %v5419_v59 = vld [vmem:[%s7174_s2 + $0xa0] sm:$0xff]  }
 0x31c   :  { %4790 = vmatprep.subr.bf16.mxu1 %v5417_v43 }
 0x31e   :  { %4775 = vmatmul.mubr.bf16.gmra.mrb[36].mxu1 %v6667_v25 }
 0x31f   :  { %4778 = vmatprep.mubr.bf16.mxu1 %v2090_v22  ;;  %4791 = vmatpush3.bf16.msra.mxu1 %v5417_v43  ;;  %v5420_v22 = vld [vmem:[%s7174_s2 + $0xa8] sm:$0xff]   ;;  %v6694_v43 = vpack.c.bf16 %v6683_v33, %v6681_v8 }
 0x320   :  { %4792 = vmatprep.subr.bf16.mxu1 %v5418_v51 }
 0x323   :  { %4793 = vmatpush3.bf16.msra.mxu1 %v5418_v51  ;;  %v5421_v51 = vld [vmem:[%s7174_s2 + $0xb0] sm:$0xff]  }
 0x324   :  { %4794 = vmatprep.subr.bf16.mxu1 %v5419_v59 }
 0x326   :  { %4779 = vmatmul.mubr.bf16.gmra.mrb[40].mxu1 %v6687_v32 }
 0x327   :  { %4782 = vmatprep.mubr.bf16.mxu1 %v6694_v43  ;;  %4795 = vmatpush3.bf16.msra.mxu1 %v5419_v59  ;;  %v5422_v59 = vld [vmem:[%s7174_s2 + $0xb8] sm:$0xff]  }
 0x328   :  { %4796 = vmatprep.subr.bf16.mxu1 %v5420_v22 }
 0x32b   :  { %4797 = vmatpush3.bf16.msra.mxu1 %v5420_v22  ;;  %v5423_v22 = vld [vmem:[%s7174_s2 + $0xc0] sm:$0xff]  }
 0x32c   :  { %4798 = vmatprep.subr.bf16.mxu1 %v5421_v51 }
 0x32e   :  { %4783 = vmatmul.mubr.bf16.gmra.mrb[44].mxu1 %v6707_v35 }
 0x32f   :  { %4799 = vmatpush3.bf16.msra.mxu1 %v5421_v51  ;;  %4802 = vmatprep.mubr.bf16.mxu1 %v2457_v0  ;;  %v5425_v0 = vld [vmem:[%s7174_s2 + $0xd0] sm:$0xff]  }
 0x330   :  { %4800 = vmatprep.subr.bf16.mxu1 %v5422_v59  ;;  %v6733_v51 = vld [vmem:[#allocation2 + $0xb1] sm:$0xff] }
 0x331   :  { %v6737_v13 = vpack.c.bf16 %v6733_v51, %v6577_v6 }
 0x333   :  { %4801 = vmatpush3.bf16.msra.mxu1 %v5422_v59  ;;  %v2449_v59 = vld [vmem:[#allocation2 + $0xf9] sm:$0xff] }
 0x334   :  { %4818 = vmatprep.subr.bf16.mxu1 %v5423_v22 }
 0x336   :  { %4803 = vmatmul.mubr.bf16.vlgmr.msra.gmra.mrb[32].mxu1 %v6719_v37 }
 0x337   :  { %4806 = vmatprep.mubr.bf16.mxu1 %v6726_v30  ;;  %4819 = vmatpush3.bf16.msra.mxu1 %v5423_v22  ;;  %v2461_v22 = vpack.c.bf16 %v6588_v28, %v2449_v59  ;;  %v6756_v59 = vpack.c.bf16 %v6598_v56, %v6596_v44 }
 0x338   :  { %4820 = vmatprep.subr.bf16.mxu1 %v5424_v62 }
 0x33b   :  { %4821 = vmatpush3.bf16.msra.mxu1 %v5424_v62  ;;  %v5427_v62 = vld [vmem:[%s7174_s2 + $0xe0] sm:$0xff]  }
 0x33c   :  { %4822 = vmatprep.subr.bf16.mxu1 %v5425_v0 }
 0x33e   :  { %4807 = vmatmul.mubr.bf16.gmra.mrb[36].mxu1 %v6737_v13 }
 0x33f   :  { %4810 = vmatprep.mubr.bf16.mxu1 %v2461_v22  ;;  %4823 = vmatpush3.bf16.msra.mxu1 %v5425_v0  ;;  %v6763_v0 = vld [vmem:[#allocation2 + $0x1a1] sm:$0xff] }
 0x340   :  { %4824 = vmatprep.subr.bf16.mxu1 %v5426_v53  ;;  %v6767_v22 = vpack.c.bf16 %v6763_v0, %v6602_v5 }
 0x343   :  { %4825 = vmatpush3.bf16.msra.mxu1 %v5426_v53  ;;  %v5429_v53 = vld [vmem:[%s7174_s2 + $0xf0] sm:$0xff]  }
 0x344   :  { %4826 = vmatprep.subr.bf16.mxu1 %v5427_v62 }
 0x346   :  { %4811 = vmatmul.mubr.bf16.gmra.mrb[40].mxu1 %v6749_v11 }
 0x347   :  { %4814 = vmatprep.mubr.bf16.mxu1 %v6756_v59  ;;  %4827 = vmatpush3.bf16.msra.mxu1 %v5427_v62  ;;  %v2659_v62 = vpack.c.bf16 %v6635_v12, %v6621_v36  ;;  %v2661_v12 = vpack.c.bf16 %v6659_v9, %v6641_v57  ;;  %v5433_v36 = vld [vmem:[%s7174_s2 + $0x110] sm:$0xff]   ;;  %v5435_v9 = vld [vmem:[%s7174_s2 + $0x120] sm:$0xff]  }
 0x348   :  { %4828 = vmatprep.subr.bf16.mxu1 %v5428_v26  ;;  %v6810_v57 = vld [vmem:[#allocation2 + $0x1b7] sm:$0xff] }
 0x34b   :  { %4829 = vmatpush3.bf16.msra.mxu1 %v5428_v26  ;;  %v5431_v26 = vld [vmem:[%s7174_s2 + $0x100] sm:$0xff]  }
 0x34c   :  { %4830 = vmatprep.subr.bf16.mxu1 %v5429_v53 }
 0x34e   :  { %4815 = vmatmul.mubr.bf16.gmra.mrb[44].mxu1 %v6767_v22 }
 0x34f   :  { %4831 = vmatpush3.bf16.msra.mxu1 %v5429_v53  ;;  %4834 = vmatprep.mubr.bf16.mxu1 %v2659_v62  ;;  %v7219_v53 = vpack.c.bf16 %v6481_v50, %v6479_v20  ;;  %v7220_v62 = vpack.c.bf16 %v6506_v58, %v6483_v52  ;;  %v7221_v20 = vpack.c.bf16 %v6555_v46, %v6508_v61  ;;  %v5443_v52 = vld [vmem:[%s7174_s2 + $0x160] sm:$0xff]   ;;  %v5444_v58 = vld [vmem:[%s7174_s2 + $0x168] sm:$0xff]  }
 0x350   :  { %4832 = vmatprep.subr.bf16.mxu1 %v5430_v63  ;;  %v7222_v50 = vpack.c.bf16 %v6514_v39, %v6512_v14  ;;  %v7223_v61 = vpack.c.bf16 %v6523_v48, %v6521_v15  ;;  %v7224_v14 = vpack.c.bf16 %v6537_v31, %v6532_v34  ;;  %v5445_v39 = vld [vmem:[%s7174_s2 + $0x170] sm:$0xff]   ;;  %v5446_v15 = vld [vmem:[%s7174_s2 + $0x178] sm:$0xff]   ;;  %v7225_v48 = vpack.c.bf16 %v6560_v29, %v6553_v47  ;;  %v5447_v34 = vld [vmem:[%s7174_s2 + $0x180] sm:$0xff]  }
 0x351   :  { %v5448_v31 = vld [vmem:[%s7174_s2 + $0x188] sm:$0xff]   ;;  %v5449_v47 = vld [vmem:[%s7174_s2 + $0x190] sm:$0xff]  }
 0x352   :  { %v6884_v29 = vld [vmem:[#allocation2 + $0xc9] sm:$0xff] }
 0x353   :  { %4833 = vmatpush3.bf16.msra.mxu1 %v5430_v63  ;;  %v6788_v63 = vld [vmem:[#allocation2 + $0xc7] sm:$0xff] }
 0x354   :  { %4850 = vmatprep.subr.bf16.mxu1 %v5431_v26  ;;  %v2662_v2 = vpack.c.bf16 %v6788_v63, %v6661_v24  ;;  %v5436_v24 = vld [vmem:[%s7174_s2 + $0x128] sm:$0xff]  }
 0x356   :  { %4835 = vmatmul.mubr.bf16.vlgmr.msra.gmra.mrb[32].mxu1 %v2660_v38  ;;  %v2663_v38 = vpack.c.bf16 %v6677_v21, %v6663_v54  ;;  %v2665_v21 = vpack.c.bf16 %v6701_v19, %v6683_v33  ;;  %v5437_v54 = vld [vmem:[%s7174_s2 + $0x130] sm:$0xff]   ;;  %v7218_v19 = vpack.c.bf16 %v6477_v40, %v6475_v16  ;;  %v5439_v33 = vld [vmem:[%s7174_s2 + $0x140] sm:$0xff]   ;;  %v5442_v40 = vld [vmem:[%s7174_s2 + $0x158] sm:$0xff]  }
 0x357   :  { %4838 = vmatprep.mubr.bf16.mxu1 %v2661_v12  ;;  %4851 = vmatpush3.bf16.msra.mxu1 %v5431_v26  ;;  %v5441_v16 = vld [vmem:[%s7174_s2 + $0x150] sm:$0xff]   ;;  %v6859_v26 = vld [vmem:[#allocation2 + $0x1b8] sm:$0xff] }
 0x358   :  { %4852 = vmatprep.subr.bf16.mxu1 %v5432_v10  ;;  %v2868_v12 = vpack.c.bf16 %v6859_v26, %v6543_v60  ;;  %v7226_v60 = vpack.c.bf16 %v6564_v17, %v6562_v45  ;;  %v5450_v45 = vld [vmem:[%s7174_s2 + $0x198] sm:$0xff]   ;;  %v7228_v17 = vpack.c.bf16 %v6592_v7, %v6588_v28  ;;  %v7230_v28 = vpack.c.bf16 %v6602_v5, %v6598_v56  ;;  %v5453_v7 = vld [vmem:[%s7174_s2 + $0x1b0] sm:$0xff]   ;;  %v5456_v56 = vld [vmem:[%s7174_s2 + $0x1c8] sm:$0xff]  }
 0x359   :  { %v5457_v5 = vld [vmem:[%s7174_s2 + $0x1d0] sm:$0xff]  }
 0x35b   :  { %4853 = vmatpush3.bf16.msra.mxu1 %v5432_v10  ;;  %v2664_v10 = vpack.c.bf16 %v6681_v8, %v6679_v55  ;;  %v2666_v8 = vpack.c.bf16 %v6810_v57, %v6703_v18  ;;  %v5438_v55 = vld [vmem:[%s7174_s2 + $0x138] sm:$0xff]   ;;  %v5440_v18 = vld [vmem:[%s7174_s2 + $0x148] sm:$0xff]  }
 0x35c   :  { %4854 = vmatprep.subr.bf16.mxu1 %v5433_v36 }
 0x35e   :  { %4839 = vmatmul.mubr.bf16.gmra.mrb[36].mxu1 %v2662_v2  ;;  %v3066_v2 = vpack.c.bf16 %v6884_v29, %v6733_v51  ;;  %v7229_v51 = vpack.c.bf16 %v6596_v44, %v6594_v27  ;;  %v5454_v27 = vld [vmem:[%s7174_s2 + $0x1b8] sm:$0xff]   ;;  %v5455_v44 = vld [vmem:[%s7174_s2 + $0x1c0] sm:$0xff]  }
 0x35f   :  { %4842 = vmatprep.mubr.bf16.mxu1 %v2663_v38  ;;  %4855 = vmatpush3.bf16.msra.mxu1 %v5433_v36  ;;  %v7227_v36 = vpack.c.bf16 %v6577_v6, %v6568_v49  ;;  %v5451_v49 = vld [vmem:[%s7174_s2 + $0x1a0] sm:$0xff]   ;;  %v5452_v6 = vld [vmem:[%s7174_s2 + $0x1a8] sm:$0xff]  }
 0x360   :  { %4856 = vmatprep.subr.bf16.mxu1 %v5434_v42 }
 0x363   :  { %4857 = vmatpush3.bf16.msra.mxu1 %v5434_v42  ;;  %v6909_v42 = vld [vmem:[#allocation2 + $0x1b9] sm:$0xff] }
 0x364   :  { %4858 = vmatprep.subr.bf16.mxu1 %v5435_v9  ;;  %v3070_v38 = vpack.c.bf16 %v6909_v42, %v6763_v0 }
 0x366   :  { %4843 = vmatmul.mubr.bf16.gmra.mrb[40].mxu1 %v2664_v10  ;;  %v3452_v10 = vld [vmem:[#allocation2 + $0x38] sm:$0xff] }
 0x367   :  { %4846 = vmatprep.mubr.bf16.mxu1 %v2665_v21  ;;  %4859 = vmatpush3.bf16.msra.mxu1 %v5435_v9  ;;  %v5458_v9 = vld [vmem:[%s7174_s2 + $0x1d8] sm:$0xff]  }
 0x368   :  { %4860 = vmatprep.subr.bf16.mxu1 %v5436_v24 }
 0x36b   :  { %4861 = vmatpush3.bf16.msra.mxu1 %v5436_v24  ;;  %v3453_v24 = vld [vmem:[#allocation2 + $0x50] sm:$0xff] }
 0x36c   :  { %4862 = vmatprep.subr.bf16.mxu1 %v5437_v54 }
 0x36e   :  { %4847 = vmatmul.mubr.bf16.gmra.mrb[44].mxu1 %v2666_v8  ;;  %v3454_v8 = vld [vmem:[#allocation2 + $0x68] sm:$0xff] }
 0x36f   :  { %4863 = vmatpush3.bf16.msra.mxu1 %v5437_v54  ;;  %4866 = vmatprep.mubr.bf16.mxu1 %v7218_v19  ;;  %v5462_v54 = vld [vmem:[%s7174_s2 + $0x1f8] sm:$0xff]  }
 0x370   :  { %4864 = vmatprep.subr.bf16.mxu1 %v5438_v55  ;;  %v3456_v19 = vld [vmem:[#allocation2 + $0x98] sm:$0xff] }
 0x373   :  { %4865 = vmatpush3.bf16.msra.mxu1 %v5438_v55  ;;  %v3455_v55 = vld [vmem:[#allocation2 + $0x80] sm:$0xff] }
 0x374   :  { %4882 = vmatprep.subr.bf16.mxu1 %v5439_v33 }
 0x376   :  { %4867 = vmatmul.mubr.bf16.vlgmr.msra.gmra.mrb[32].mxu1 %v7219_v53 }
 0x377   :  { %4870 = vmatprep.mubr.bf16.mxu1 %v7220_v62  ;;  %4883 = vmatpush3.bf16.msra.mxu1 %v5439_v33  ;;  %v3457_v33 = vld [vmem:[#allocation2 + $0xb0] sm:$0xff] }
 0x378   :  { %4884 = vmatprep.subr.bf16.mxu1 %v5440_v18  ;;  %v3470_v53 = vpack.c.bf16 %v3457_v33, %v3456_v19  ;;  %v5465_v62 = vld [vmem:[%s7174_s2 + $0x210] sm:$0xff]  }
 0x37b   :  { %4885 = vmatpush3.bf16.msra.mxu1 %v5440_v18  ;;  %v5464_v18 = vld [vmem:[%s7174_s2 + $0x208] sm:$0xff]  }
 0x37c   :  { %4886 = vmatprep.subr.bf16.mxu1 %v5441_v16 }
 0x37e   :  { %4871 = vmatmul.mubr.bf16.gmra.mrb[36].mxu1 %v7221_v20  ;;  %v5477_v20 = vld [vmem:[#allocation2] sm:$0xff] }
 0x37f   :  { %4874 = vmatprep.mubr.bf16.mxu1 %v7222_v50  ;;  %4887 = vmatpush3.bf16.msra.mxu1 %v5441_v16  ;;  %v3460_v16 = vld [vmem:[#allocation2 + $0x128] sm:$0xff]  ;;  %v3471_v50 = vpack.c.bf16 %v5477_v20, %v6555_v46 }
 0x380   :  { %4888 = vmatprep.subr.bf16.mxu1 %v5442_v40  ;;  %v5468_v46 = vld [vmem:[%s7174_s2 + $0x228] sm:$0xff]  }
 0x383   :  { %4889 = vmatpush3.bf16.msra.mxu1 %v5442_v40  ;;  %v3461_v40 = vld [vmem:[#allocation2 + $0x140] sm:$0xff] }
 0x384   :  { %4890 = vmatprep.subr.bf16.mxu1 %v5443_v52 }
 0x386   :  { %4875 = vmatmul.mubr.bf16.gmra.mrb[40].mxu1 %v7223_v61  ;;  %v5467_v61 = vld [vmem:[%s7174_s2 + $0x220] sm:$0xff]  }
 0x387   :  { %4878 = vmatprep.mubr.bf16.mxu1 %v7224_v14  ;;  %4891 = vmatpush3.bf16.msra.mxu1 %v5443_v52  ;;  %v5466_v52 = vld [vmem:[%s7174_s2 + $0x218] sm:$0xff]   ;;  %v5469_v14 = vld [vmem:[%s7174_s2 + $0x230] sm:$0xff]  }
 0x388   :  { %4892 = vmatprep.subr.bf16.mxu1 %v5444_v58 }
 0x38b   :  { %4893 = vmatpush3.bf16.msra.mxu1 %v5444_v58  ;;  %v3472_v58 = vpack.c.bf16 %v3461_v40, %v3460_v16 }
 0x38c   :  { %4894 = vmatprep.subr.bf16.mxu1 %v5445_v39 }
 0x38e   :  { %4879 = vmatmul.mubr.bf16.gmra.mrb[44].mxu1 %v2868_v12  ;;  %v5470_v12 = vld [vmem:[%s7174_s2 + $0x238] sm:$0xff]  }
 0x38f   :  { %4895 = vmatpush3.bf16.msra.mxu1 %v5445_v39  ;;  %4898 = vmatprep.mubr.bf16.mxu1 %v7225_v48  ;;  %v3475_v39 = vpack.c.bf16 %v5477_v20, %v6859_v26  ;;  %v3669_v26 = vld [vmem:[#allocation2 + $0x1d1] sm:$0xff] }
 0x390   :  { %4896 = vmatprep.subr.bf16.mxu1 %v5446_v15 }
 0x393   :  { %4897 = vmatpush3.bf16.msra.mxu1 %v5446_v15  ;;  %v3677_v15 = vpack.c.bf16 %v3669_v26, %v6909_v42 }
 0x394   :  { %4914 = vmatprep.subr.bf16.mxu1 %v5447_v34 }
 0x396   :  { %4899 = vmatmul.mubr.bf16.vlgmr.msra.gmra.mrb[32].mxu1 %v7226_v60  ;;  %v7234_v60 = vld [vmem:[#allocation9_spill] sm:$0xff] }
 0x397   :  { %4902 = vmatprep.mubr.bf16.mxu1 %v7227_v36  ;;  %4915 = vmatpush3.bf16.msra.mxu1 %v5447_v34 }
 0x398   :  { %4916 = vmatprep.subr.bf16.mxu1 %v5448_v31 }
 0x39b   :  { %4917 = vmatpush3.bf16.msra.mxu1 %v5448_v31 }
 0x39c   :  { %4918 = vmatprep.subr.bf16.mxu1 %v5449_v47 }
 0x39e   :  { %4903 = vmatmul.mubr.bf16.gmra.mrb[36].mxu1 %v3066_v2 }
 0x39f   :  { %4906 = vmatprep.mubr.bf16.mxu1 %v7228_v17  ;;  %4919 = vmatpush3.bf16.msra.mxu1 %v5449_v47  ;;  %v7235_v47 = vld [vmem:[#allocation10_spill] sm:$0xff] }
 0x3a0   :  { %4920 = vmatprep.subr.bf16.mxu1 %v5450_v45 }
 0x3a3   :  { %4921 = vmatpush3.bf16.msra.mxu1 %v5450_v45 }
 0x3a4   :  { %4922 = vmatprep.subr.bf16.mxu1 %v5451_v49 }
 0x3a6   :  { %4907 = vmatmul.mubr.bf16.gmra.mrb[40].mxu1 %v7229_v51  ;;  %v7240_v51 = vld [vmem:[#allocation15_spill] sm:$0xff] }
 0x3a7   :  { %4910 = vmatprep.mubr.bf16.mxu1 %v7230_v28  ;;  %4923 = vmatpush3.bf16.msra.mxu1 %v5451_v49  ;;  %v7239_v49 = vld [vmem:[#allocation14_spill] sm:$0xff] }
 0x3a8   :  { %4924 = vmatprep.subr.bf16.mxu1 %v5452_v6 }
 0x3ab   :  { %4925 = vmatpush3.bf16.msra.mxu1 %v5452_v6 }
 0x3ac   :  { %4926 = vmatprep.subr.bf16.mxu1 %v5453_v7 }
 0x3ae   :  { %4911 = vmatmul.mubr.bf16.gmra.mrb[44].mxu1 %v3070_v38  ;;  %v7242_v38 = vld [vmem:[#allocation17_spill] sm:$0xff] }
 0x3af   :  { %4927 = vmatpush3.bf16.msra.mxu1 %v5453_v7  ;;  %4930 = vmatprep.mubr.bf16.mxu1 %v6645_v4  ;;  %v3257_v4 = vld [vmem:[#allocation2 + $0xdf] sm:$0xff]  ;;  %v7241_v7 = vld [vmem:[#allocation16_spill] sm:$0xff] }
 0x3b0   :  { %4928 = vmatprep.subr.bf16.mxu1 %v5454_v27  ;;  %v3269_v0 = vpack.c.bf16 %v3257_v4, %v6788_v63  ;;  %v3265_v63 = vld [vmem:[#allocation2 + $0x1cf] sm:$0xff] }
 0x3b1   :  { %v3273_v21 = vpack.c.bf16 %v3265_v63, %v6810_v57  ;;  %v3469_v57 = vpack.c.bf16 %v3455_v55, %v3454_v8 }
 0x3b3   :  { %4929 = vmatpush3.bf16.msra.mxu1 %v5454_v27 }
 0x3b4   :  { %4946 = vmatprep.subr.bf16.mxu1 %v5455_v44 }
 0x3b6   :  { %4931 = vmatmul.mubr.bf16.vlgmr.msra.gmra.mrb[32].mxu1 %v6652_v23  ;;  %v5460_v23 = vld [vmem:[%s7174_s2 + $0x1e8] sm:$0xff]  }
 0x3b7   :  { %4934 = vmatprep.mubr.bf16.mxu1 %v6667_v25  ;;  %4947 = vmatpush3.bf16.msra.mxu1 %v5455_v44  ;;  %v5459_v25 = vld [vmem:[%s7174_s2 + $0x1e0] sm:$0xff]  }
 0x3b8   :  { %4948 = vmatprep.subr.bf16.mxu1 %v5456_v56  ;;  %v7243_v44 = vld [vmem:[#allocation18_spill] sm:$0xff] }
 0x3bb   :  { %4949 = vmatpush3.bf16.msra.mxu1 %v5456_v56 }
 0x3bc   :  { %4950 = vmatprep.subr.bf16.mxu1 %v5457_v5 }
 0x3be   :  { %4935 = vmatmul.mubr.bf16.gmra.mrb[36].mxu1 %v3269_v0  ;;  %v7245_v0 = vld [vmem:[#allocation20_spill] sm:$0xff] }
 0x3bf   :  { %4938 = vmatprep.mubr.bf16.mxu1 %v6687_v32  ;;  %4951 = vmatpush3.bf16.msra.mxu1 %v5457_v5  ;;  %v5461_v32 = vld [vmem:[%s7174_s2 + $0x1f0] sm:$0xff]   ;;  %v7244_v5 = vld [vmem:[#allocation19_spill] sm:$0xff] }
 0x3c0   :  { %4952 = vmatprep.subr.bf16.mxu1 %v5458_v9 }
 0x3c3   :  { %4953 = vmatpush3.bf16.msra.mxu1 %v5458_v9 }
 0x3c4   :  { %4954 = vmatprep.subr.bf16.mxu1 %v5459_v25 }
 0x3c6   :  { %4939 = vmatmul.mubr.bf16.gmra.mrb[40].mxu1 %v6694_v43  ;;  %v3468_v43 = vpack.c.bf16 %v3453_v24, %v3452_v10 }
 0x3c7   :  { %4942 = vmatprep.mubr.bf16.mxu1 %v6707_v35  ;;  %4955 = vmatpush3.bf16.msra.mxu1 %v5459_v25  ;;  %v5463_v35 = vld [vmem:[%s7174_s2 + $0x200] sm:$0xff]  }
 0x3c8   :  { %4956 = vmatprep.subr.bf16.mxu1 %v5460_v23 }
 0x3cb   :  { %4957 = vmatpush3.bf16.msra.mxu1 %v5460_v23 }
 0x3cc   :  { %4958 = vmatprep.subr.bf16.mxu1 %v5461_v32 }
 0x3ce   :  { %4943 = vmatmul.mubr.bf16.gmra.mrb[44].mxu1 %v3273_v21 }
 0x3cf   :  { %4959 = vmatpush3.bf16.msra.mxu1 %v5461_v32  ;;  %4962 = vmatprep.mubr.bf16.mxu1 %v3468_v43 }
 0x3d0   :  { %4960 = vmatprep.subr.bf16.mxu1 %v5462_v54 }
 0x3d3   :  { %4961 = vmatpush3.bf16.msra.mxu1 %v5462_v54 }
 0x3d4   :  { %4978 = vmatprep.subr.bf16.mxu1 %v5463_v35 }
 0x3d6   :  { %4963 = vmatmul.mubr.bf16.vlgmr.msra.gmra.mrb[32].mxu1 %v3469_v57 }
 0x3d7   :  { %4966 = vmatprep.mubr.bf16.mxu1 %v3470_v53  ;;  %4979 = vmatpush3.bf16.msra.mxu1 %v5463_v35 }
 0x3d8   :  { %4980 = vmatprep.subr.bf16.mxu1 %v5464_v18 }
 0x3db   :  { %4981 = vmatpush3.bf16.msra.mxu1 %v5464_v18 }
 0x3dc   :  { %4982 = vmatprep.subr.bf16.mxu1 %v5465_v62 }
 0x3de   :  { %4967 = vmatmul.mubr.bf16.gmra.mrb[36].mxu1 %v3471_v50 }
 0x3df   :  { %4970 = vmatprep.mubr.bf16.mxu1 %v3472_v58  ;;  %4983 = vmatpush3.bf16.msra.mxu1 %v5465_v62 }
 0x3e0   :  { %4984 = vmatprep.subr.bf16.mxu1 %v5466_v52 }
 0x3e3   :  { %4985 = vmatpush3.bf16.msra.mxu1 %v5466_v52 }
 0x3e4   :  { %4986 = vmatprep.subr.bf16.mxu1 %v5467_v61 }
 0x3e6   :  { %4971 = vmatmul.mubr.bf16.gmra.mrb[40].mxu1 %v6615_v41 }
 0x3e7   :  { %4974 = vmatprep.mubr.bf16.mxu1 %v6625_v3  ;;  %4987 = vmatpush3.bf16.msra.mxu1 %v5467_v61  ;;  %v3661_v3 = vld [vmem:[#allocation2 + $0xe1] sm:$0xff] }
 0x3e8   :  { %4988 = vmatprep.subr.bf16.mxu1 %v5468_v46  ;;  %v3673_v41 = vpack.c.bf16 %v3661_v3, %v6884_v29 }
 0x3eb   :  { %4989 = vmatpush3.bf16.msra.mxu1 %v5468_v46 }
 0x3ec   :  { %4990 = vmatprep.subr.bf16.mxu1 %v5469_v14 }
 0x3ee   :  { %4975 = vmatmul.mubr.bf16.gmra.mrb[44].mxu1 %v3475_v39 }
 0x3ef   :  { %4991 = vmatpush3.bf16.msra.mxu1 %v5469_v14  ;;  %4994 = vmatprep.mubr.bf16.mxu1 %v6719_v37  ;;  %v7231_v37 = vld [vmem:[#allocation6_spill] sm:$0xff] }
 0x3f0   :  { %4992 = vmatprep.subr.bf16.mxu1 %v5470_v12  ;;  %v3980_v48 = vadd.f32 %v7231_v37, %v6241_v1 }
 0x3f3   :  { %4993 = vmatpush3.bf16.msra.mxu1 %v5470_v12 }
 0x3f6   :  { %4995 = vmatmul.mubr.bf16.vlgmr.msra.gmra.mrb[32].mxu1 %v6726_v30  ;;  %v7232_v30 = vld [vmem:[#allocation7_spill] sm:$0xff] }
 0x3f7   :  { %4998 = vmatprep.mubr.bf16.mxu1 %v6737_v13  ;;  %v3981_v34 = vadd.f32 %v7232_v30, %v3980_v48  ;;  %v7233_v13 = vld [vmem:[#allocation8_spill] sm:$0xff] }
 0x3f9   :  { %v3982_v31 = vadd.f32 %v7233_v13, %v3981_v34 }
 0x3fb   :  { %v3983_v36 = vadd.f32 %v7234_v60, %v3982_v31 }
 0x3fd   :  { %v3984_v29 = vadd.f32 %v7235_v47, %v3983_v36 }
 0x3fe   :  { %4999 = vmatmul.mubr.bf16.gmra.mrb[36].mxu1 %v3673_v41 }
 0x3ff   :  { %5002 = vmatprep.mubr.bf16.mxu1 %v6749_v11  ;;  %v7236_v11 = vld [vmem:[#allocation11_spill] sm:$0xff] }
 0x400   :  { %v3985_v2 = vadd.f32 %v7236_v11, %v3984_v29 }
 0x406   :  { %5003 = vmatmul.mubr.bf16.gmra.mrb[40].mxu1 %v6756_v59  ;;  %v7237_v59 = vld [vmem:[#allocation12_spill] sm:$0xff] }
 0x407   :  { %5006 = vmatprep.mubr.bf16.mxu1 %v6767_v22  ;;  %v3986_v45 = vadd.f32 %v7237_v59, %v3985_v2  ;;  %v7238_v22 = vld [vmem:[#allocation13_spill] sm:$0xff] }
 0x409   :  { %v3987_v17 = vadd.f32 %v7238_v22, %v3986_v45 }
 0x40b   :  { %v3988_v6 = vadd.f32 %v7239_v49, %v3987_v17 }
 0x40d   :  { %v3989_v28 = vadd.f32 %v7240_v51, %v3988_v6 }
 0x40e   :  { %5007 = vmatmul.mubr.bf16.gmra.mrb[44].mxu1 %v3677_v15 }
 0x40f   :  { %v3990_v42 = vadd.f32 %v7241_v7, %v3989_v28 }
 0x411   :  { %v3991_v27 = vadd.f32 %v7242_v38, %v3990_v42 }
 0x413   :  { %v3992_v56 = vadd.f32 %v7243_v44, %v3991_v27 }
 0x415   :  { %v3993_v4 = vadd.f32 %v7244_v5, %v3992_v56 }
 0x417   :  { %v3994_v9 = vadd.f32 %v7245_v0, %v3993_v4 }
 0x419   :  { %v3995_v25 = vrot.slane %v3994_v9, 4 }
 0x41b   :  { %v3996_v23 = vadd.f32 %v3995_v25, %v3994_v9 }
 0x41d   :  { %v3997_v32 = vrot.slane %v3996_v23, 2 }
 0x41f   :  { %v3998_v63 = vadd.f32 %v3997_v32, %v3996_v23 }
 0x421   :  { %v3999_v10 = vrot.slane %v3998_v63, 1 }
 0x423   :  { %v4000_v24 = vadd.f32 %v3999_v10, %v3998_v63 }
 0x425   :  { %v7000_v21 = vmul.f32 0.0078125, %v4000_v24 }
 0x427   :  { %v4002_v54 = vsub.f32 %v6241_v1, %v7000_v21  ;;  %v4003_v43 = vsub.f32 %v7231_v37, %v7000_v21  ;;  %v4004_v55 = vsub.f32 %v7232_v30, %v7000_v21  ;;  %v4005_v33 = vsub.f32 %v7233_v13, %v7000_v21 }
 0x428   :  { %v4006_v53 = vsub.f32 %v7234_v60, %v7000_v21  ;;  %v4007_v40 = vsub.f32 %v7235_v47, %v7000_v21  ;;  %v4008_v52 = vsub.f32 %v7236_v11, %v7000_v21  ;;  %v4009_v14 = vsub.f32 %v7237_v59, %v7000_v21 }
 0x429   :  { %v4018_v35 = vmul.f32 %v4002_v54, %v4002_v54  ;;  %v4019_v8 = vmul.f32 %v4003_v43, %v4003_v43  ;;  %v4020_v57 = vmul.f32 %v4004_v55, %v4004_v55  ;;  %v4021_v62 = vmul.f32 %v4005_v33, %v4005_v33 }
 0x42a   :  { %v4022_v20 = vmul.f32 %v4006_v53, %v4006_v53  ;;  %v4023_v58 = vmul.f32 %v4007_v40, %v4007_v40  ;;  %v4024_v39 = vmul.f32 %v4008_v52, %v4008_v52  ;;  %v4010_v48 = vsub.f32 %v7238_v22, %v7000_v21 }
 0x42b   :  { %v4034_v19 = vadd.f32 %v4019_v8, %v4018_v35  ;;  %v4025_v34 = vmul.f32 %v4009_v14, %v4009_v14  ;;  %v4011_v45 = vsub.f32 %v7239_v49, %v7000_v21  ;;  %v4012_v9 = vsub.f32 %v7240_v51, %v7000_v21 }
 0x42c   :  { %v4026_v17 = vmul.f32 %v4010_v48, %v4010_v48  ;;  %v4013_v24 = vsub.f32 %v7241_v7, %v7000_v21 }
 0x42d   :  { %v4035_v18 = vadd.f32 %v4034_v19, %v4020_v57  ;;  %v4027_v25 = vmul.f32 %v4011_v45, %v4011_v45  ;;  %v4028_v54 = vmul.f32 %v4012_v9, %v4012_v9  ;;  %v4014_v57 = vsub.f32 %v7242_v38, %v7000_v21 }
 0x42f   :  { %v4036_v16 = vadd.f32 %v4035_v18, %v4021_v62  ;;  %v4029_v18 = vmul.f32 %v4013_v24, %v4013_v24 }
 0x431   :  { %v4037_v50 = vadd.f32 %v4036_v16, %v4022_v20  ;;  %v4015_v20 = vsub.f32 %v7243_v44, %v7000_v21 }
 0x433   :  { %v4038_v61 = vadd.f32 %v4037_v50, %v4023_v58  ;;  %v4030_v50 = vmul.f32 %v4014_v57, %v4014_v57  ;;  %v4031_v48 = vmul.f32 %v4015_v20, %v4015_v20 }
 0x435   :  { %v4039_v41 = vadd.f32 %v4038_v61, %v4024_v39 }
 0x437   :  { %v4040_v36 = vadd.f32 %v4039_v41, %v4025_v34 }
 0x439   :  { %v4041_v27 = vadd.f32 %v4040_v36, %v4026_v17 }
 0x43b   :  { %v4042_v32 = vadd.f32 %v4041_v27, %v4027_v25 }
 0x43d   :  { %v4043_v55 = vadd.f32 %v4042_v32, %v4028_v54 }
 0x43f   :  { %v4044_v62 = vadd.f32 %v4043_v55, %v4029_v18 }
 0x441   :  { %v4045_v14 = vadd.f32 %v4044_v62, %v4030_v50 }
 0x4c9   :  { %v7016_v46 = vpop.f32.mrb[32].mxu1 }
 0x4ca   :  { %v7020_v12 = vpop.f32.mrb[33].mxu1 }
 0x4cb   :  { %v7022_v3 = vpop.f32.mrb[34].mxu1 }
 0x4cc   :  { %v7024_v26 = vpop.f32.mrb[35].mxu1 }
 0x4cd   :  { %v3856_v15 = vadd.f32 %v7024_v26, %v7020_v12 }
 0x4cf   :  { %v3857_v31 = vadd.f32 %v7016_v46, %v3856_v15  ;;  %v4016_v15 = vsub.f32 %v7244_v5, %v7000_v21 }
 0x4d1   :  { %v7031_v29 = vpop.f32.mrb[36].mxu1  ;;  %v3858_v2 = vadd.f32 %v7022_v3, %v3857_v31  ;;  %v4046_v31 = vadd.f32 %v4045_v14, %v4031_v48  ;;  %v4032_v45 = vmul.f32 %v4016_v15, %v4016_v15 }
 0x4d2   :  { %v7036_v6 = vpop.f32.mrb[37].mxu1 }
 0x4d3   :  { %v3859_v28 = vadd.f32 %v3858_v2, %v7036_v6  ;;  %v7039_v42 = vpop.f32.mrb[38].mxu1  ;;  %v4017_v2 = vsub.f32 %v7245_v0, %v7000_v21 }
 0x4d4   :  { %7246 = vst [vmem:[#allocation6_spill] sm:$0xff] %v7039_v42  ;;  %v7041_v56 = vpop.f32.mrb[39].mxu1 }
 0x4d5   :  { %v3860_v4 = vadd.f32 %v3859_v28, %v7041_v56  ;;  %v4047_v28 = vadd.f32 %v4046_v31, %v4032_v45 }
 0x4d7   :  { %v3861_v23 = vadd.f32 %v7031_v29, %v3860_v4  ;;  %v4033_v4 = vmul.f32 %v4017_v2, %v4017_v2 }
 0x4d9   :  { %v7047_v63 = vpop.f32.mrb[40].mxu1  ;;  %v3862_v10 = vadd.f32 %v7039_v42, %v3861_v23  ;;  %v4048_v25 = vadd.f32 %v4047_v28, %v4033_v4 }
 0x4da   :  { %7247 = vst [vmem:[#allocation7_spill] sm:$0xff] %v7047_v63  ;;  %v7052_v43 = vpop.f32.mrb[41].mxu1 }
 0x4db   :  { %7248 = vst [vmem:[#allocation8_spill] sm:$0xff] %v7052_v43  ;;  %v3863_v35 = vadd.f32 %v3862_v10, %v7052_v43  ;;  %v7055_v8 = vpop.f32.mrb[42].mxu1  ;;  %v4049_v10 = vrot.slane %v4048_v25, 4 }
 0x4dc   :  { %7249 = vst [vmem:[#allocation9_spill] sm:$0xff] %v7055_v8  ;;  %v7057_v19 = vpop.f32.mrb[43].mxu1 }
 0x4dd   :  { %7250 = vst [vmem:[#allocation10_spill] sm:$0xff] %v7057_v19  ;;  %v3864_v33 = vadd.f32 %v3863_v35, %v7057_v19  ;;  %v4050_v35 = vadd.f32 %v4049_v10, %v4048_v25 }
 0x4df   :  { %v3865_v53 = vadd.f32 %v7047_v63, %v3864_v33 }
 0x4e1   :  { %v7063_v16 = vpop.f32.mrb[44].mxu1  ;;  %v3866_v40 = vadd.f32 %v7055_v8, %v3865_v53 }
 0x4e2   :  { %7251 = vst [vmem:[#allocation11_spill] sm:$0xff] %v7063_v16  ;;  %v7068_v52 = vpop.f32.mrb[45].mxu1 }
 0x4e3   :  { %7252 = vst [vmem:[#allocation12_spill] sm:$0xff] %v7068_v52  ;;  %v3867_v58 = vadd.f32 %v3866_v40, %v7068_v52  ;;  %v7071_v61 = vpop.f32.mrb[46].mxu1 }
 0x4e4   :  { %7253 = vst [vmem:[#allocation13_spill] sm:$0xff] %v7071_v61  ;;  %v7073_v39 = vpop.f32.mrb[47].mxu1 }
 0x4e5   :  { %v3868_v41 = vadd.f32 %v3867_v58, %v7073_v39 }
 0x4e7   :  { %v3869_v34 = vadd.f32 %v7063_v16, %v3868_v41 }
 0x4e9   :  { %v3870_v36 = vadd.f32 %v7071_v61, %v3869_v34 }
 0x4eb   :  { %v3871_v17 = vrot.slane %v3870_v36, 4 }
 0x4ed   :  { %v3872_v27 = vadd.f32 %v3871_v17, %v3870_v36  ;;  %v4051_v36 = vrot.slane %v4050_v35, 2 }
 0x4ef   :  { %v3873_v9 = vrot.slane %v3872_v27, 2  ;;  %v4052_v17 = vadd.f32 %v4051_v36, %v4050_v35 }
 0x4f1   :  { %v3874_v23 = vadd.f32 %v3873_v9, %v3872_v27  ;;  %v4053_v25 = vrot.slane %v4052_v17, 1 }
 0x4f3   :  { %v3875_v32 = vrot.slane %v3874_v23, 1 }
 0x4f5   :  { %v3876_v24 = vadd.f32 %v3875_v32, %v3874_v23 }
 0x4f7   :  { %v7082_v54 = vmul.f32 0.0078125, %v3876_v24 }
 0x4f9   :  { %v3878_v55 = vsub.f32 %v7020_v12, %v7082_v54  ;;  %v3879_v33 = vsub.f32 %v7024_v26, %v7082_v54  ;;  %v3880_v57 = vsub.f32 %v7016_v46, %v7082_v54  ;;  %v3881_v18 = vsub.f32 %v7022_v3, %v7082_v54 }
 0x4fa   :  { %v3882_v53 = vsub.f32 %v7036_v6, %v7082_v54  ;;  %v3883_v62 = vsub.f32 %v7041_v56, %v7082_v54  ;;  %v3884_v40 = vsub.f32 %v7031_v29, %v7082_v54  ;;  %v3885_v20 = vsub.f32 %v7039_v42, %v7082_v54 }
 0x4fb   :  { %v3886_v50 = vsub.f32 %v7052_v43, %v7082_v54  ;;  %v3887_v58 = vsub.f32 %v7057_v19, %v7082_v54  ;;  %v3888_v14 = vsub.f32 %v7047_v63, %v7082_v54  ;;  %v3889_v41 = vsub.f32 %v7055_v8, %v7082_v54 }
 0x4fc   :  { %v3890_v15 = vsub.f32 %v7068_v52, %v7082_v54  ;;  %v3891_v48 = vsub.f32 %v7073_v39, %v7082_v54  ;;  %v3892_v34 = vsub.f32 %v7063_v16, %v7082_v54  ;;  %v3893_v31 = vsub.f32 %v7071_v61, %v7082_v54 }
 0x4fd   :  { %v3894_v2 = vmul.f32 %v3878_v55, %v3878_v55  ;;  %v3895_v45 = vmul.f32 %v3879_v33, %v3879_v33  ;;  %v3896_v28 = vmul.f32 %v3880_v57, %v3880_v57  ;;  %v3897_v4 = vmul.f32 %v3881_v18, %v3881_v18 }
 0x4fe   :  { %v3898_v23 = vmul.f32 %v3882_v53, %v3882_v53  ;;  %v3899_v10 = vmul.f32 %v3883_v62, %v3883_v62  ;;  %v4054_v52 = vadd.f32 %v4053_v25, %v4052_v17  ;;  %v3900_v8 = vmul.f32 %v3884_v40, %v3884_v40 }
 0x4ff   :  { %v3910_v27 = vadd.f32 %v3895_v45, %v3894_v2  ;;  %v3901_v16 = vmul.f32 %v3885_v20, %v3885_v20  ;;  %v3902_v61 = vmul.f32 %v3886_v50, %v3886_v50  ;;  %v3903_v55 = vmul.f32 %v3887_v58, %v3887_v58 }
 0x500   :  { %v4055_v43 = vmul.f32 0.0078125, %v4054_v52  ;;  %v3904_v57 = vmul.f32 %v3888_v14, %v3888_v14  ;;  %v3905_v18 = vmul.f32 %v3889_v41, %v3889_v41  ;;  %v3906_v53 = vmul.f32 %v3890_v15, %v3890_v15 }
 0x501   :  { %v3911_v9 = vadd.f32 %v3910_v27, %v3896_v28  ;;  %v3907_v62 = vmul.f32 %v3891_v48, %v3891_v48  ;;  %v3908_v17 = vmul.f32 %v3892_v34, %v3892_v34  ;;  %v3909_v27 = vmul.f32 %v3893_v31, %v3893_v31  ;;  %v7254_v48 = vld [vmem:[#allocation21_spill] sm:$0xff] }
 0x502   :  { %v4056_v35 = vadd.f32 1e-05, %v4055_v43  ;;  %v4061_v34 = vsub.s32 4, %v7254_v48 }
 0x503   :  { %v3912_v32 = vadd.f32 %v3911_v9, %v3897_v4  ;;  %v4086_v9 = vsub.s32 5, %v7254_v48 }
 0x504   :  { %5473 = vrsqrt.f32 %v4056_v35 }
 0x505   :  { %v3913_v24 = vadd.f32 %v3912_v32, %v3898_v23 }
 0x507   :  { %v3914_v63 = vadd.f32 %v3913_v24, %v3899_v10 }
 0x509   :  { %v3915_v19 = vadd.f32 %v3914_v63, %v3900_v8 }
 0x50b   :  { %v3916_v42 = vadd.f32 %v3915_v19, %v3901_v16 }
 0x50d   :  { %v3917_v33 = vadd.f32 %v3916_v42, %v3902_v61  ;;  %v5478_v42 = vld [vmem:[%s7175_s3] sm:$0x3f]  ;;  %s5505_s3 = smov [#allocation3]  }
 0x50e   :  { %v5474_v8 = vpop.eup %5473  ;;  %s4157_s8 = sshll.u32 %s5505_s3, 4  ;;  %s4158_s8 = int_to_ptr.vmem [resolvable:$true] %s4157_s8 }
 0x50f   :  { %v3918_v36 = vadd.f32 %v3917_v33, %v3903_v55  ;;  %v4058_v43 = vmul.f32 %v5478_v42, %v5474_v8  ;;  %s5479_s9 = scalar_lea.vmem %s4158_s8, 2048  ;;  %p5484_p1 = scmp.lt.s32.totalorder %s4158_s8, %s4158_s8 }
 0x510   :  { %p5480_p0 = scmp.ne.s32.totalorder %s4158_s8, %s5479_s9  ;;  %p5485_p2 = scmp.lt.s32.totalorder %s5479_s9, %s5479_s9 }
 0x511   :  { %v3919_v2 = vadd.f32 %v3918_v36, %v3904_v57  ;;  %v4079_v50 = vmul.f32 %v4058_v43, %v7000_v21  ;;  %v4062_v25 = vrot.slane %v4058_v43, %v4061_v34  ;;  %v3937_v36 = vsub.s32 2, %v7254_v48 }
 0x512   :  { %p5486_p3 = por %p5485_p2, %p5484_p1 }
 0x513   :  { %v3920_v45 = vadd.f32 %v3919_v2, %v3905_v18  ;;  %v4081_v41 = vrot.slane %v4079_v50, 7  ;;  %v4078_v32 = vmul.f32 %v7245_v0, %v4062_v25  ;;  %v4076_v10 = vmul.f32 %v7243_v44, %v4062_v25  ;;  %v7255_v50 = vld [vmem:[#allocation6_spill] sm:$0xff] }
 0x514   :  { %v4063_v21 = vmul.f32 %v6241_v1, %v4062_v25  ;;  %v4064_v33 = vmul.f32 %v7231_v37, %v4062_v25  ;;  %v4065_v35 = vmul.f32 %v7232_v30, %v4062_v25  ;;  %v4066_v57 = vmul.f32 %v7233_v13, %v4062_v25  ;;  %p5487_p4 = pnand %p5486_p3, %p5480_p0 }
 0x515   :  { %v3921_v28 = vadd.f32 %v3920_v45, %v3906_v53  ;;  %v4083_v4 = vsub.f32 %v5478_v42, %v4081_v41  ;;  %v4067_v18 = vmul.f32 %v7234_v60, %v4062_v25  ;;  %v4068_v2 = vmul.f32 %v7235_v47, %v4062_v25  ;;  %v7257_v41 = vld [vmem:[#allocation10_spill] sm:$0xff] }
 0x516   :  { %v4069_v0 = vmul.f32 %v7236_v11, %v4062_v25  ;;  %v4070_v53 = vmul.f32 %v7237_v59, %v4062_v25  ;;  %v4071_v1 = vmul.f32 %v7238_v22, %v4062_v25  ;;  %v4072_v45 = vmul.f32 %v7239_v49, %v4062_v25 }
 0x517   :  { %v3922_v40 = vadd.f32 %v3921_v28, %v3907_v62  ;;  %v4087_v23 = vrot.slane %v4083_v4, %v4086_v9  ;;  %v4073_v37 = vmul.f32 %v7240_v51, %v4062_v25  ;;  %v4074_v13 = vmul.f32 %v7241_v7, %v4062_v25  ;;  %v7261_v4 = vld [vmem:[#allocation11_spill] sm:$0xff]  ;;  %v7262_v9 = vld [vmem:[#allocation13_spill] sm:$0xff] }
 0x518   :  { %v4075_v62 = vmul.f32 %v7242_v38, %v4062_v25  ;;  %v4077_v60 = vmul.f32 %v7244_v5, %v4062_v25  ;;  %v3962_v49 = vsub.s32 3, %v7254_v48 }
 0x519   :  { %v3923_v20 = vadd.f32 %v3922_v40, %v3908_v17  ;;  %v7124_v24 = vadd.f32 %v4087_v23, %v4078_v32  ;;  %v4101_v55 = vadd.f32 %v4087_v23, %v4076_v10  ;;  %v4088_v28 = vadd.f32 %v4087_v23, %v4063_v21 }
 0x51a   :  { %v4089_v47 = vadd.f32 %v4087_v23, %v4064_v33  ;;  %v4090_v17 = vadd.f32 %v4087_v23, %v4065_v35  ;;  %v4091_v11 = vadd.f32 %v4087_v23, %v4066_v57  ;;  %v4093_v22 = vadd.f32 %v4087_v23, %v4068_v2 }
 0x51b   :  { %v3924_v63 = vadd.f32 %v3923_v20, %v3909_v27  ;;  %v4092_v27 = vadd.f32 %v4087_v23, %v4067_v18  ;;  %v4094_v20 = vadd.f32 %v4087_v23, %v4069_v0  ;;  %v4095_v51 = vadd.f32 %v4087_v23, %v4070_v53 }
 0x51c   :  { %v4098_v25 = vadd.f32 %v4087_v23, %v4073_v37  ;;  %v4100_v32 = vadd.f32 %v4087_v23, %v4075_v62  ;;  %v4102_v10 = vadd.f32 %v4087_v23, %v4077_v60 }
 0x51d   :  { %v3925_v52 = vrot.slane %v3924_v63, 4 }
 0x51f   :  { %v3926_v19 = vadd.f32 %v3925_v52, %v3924_v63  ;;  %v4096_v63 = vadd.f32 %v4087_v23, %v4071_v1 }
 0x521   :  { %v3927_v16 = vrot.slane %v3926_v19, 2 }
 0x523   :  { %v3928_v61 = vadd.f32 %v3927_v16, %v3926_v19 }
 0x525   :  { %v3929_v58 = vrot.slane %v3928_v61, 1 }
 0x527   :  { %v3930_v14 = vadd.f32 %v3929_v58, %v3928_v61 }
 0x529   :  { %v3931_v15 = vmul.f32 0.0078125, %v3930_v14  ;;  %v7256_v14 = vld [vmem:[#allocation8_spill] sm:$0xff] }
 0x52b   :  { %v3932_v31 = vadd.f32 1e-05, %v3931_v15 }
 0x52d   :  { %5475 = vrsqrt.f32 %v3932_v31 }
 0x537   :  { %v5476_v44 = vpop.eup %5475 }
 0x538   :  { %v3934_v30 = vmul.f32 %v5478_v42, %v5476_v44 }
 0x53a   :  { %v3938_v40 = vrot.slane %v3934_v30, %v3937_v36  ;;  %v3955_v59 = vmul.f32 %v3934_v30, %v7082_v54 }
 0x53c   :  { %v3952_v7 = vmul.f32 %v3938_v40, %v7073_v39  ;;  %v3957_v8 = vrot.slane %v3955_v59, 7  ;;  %v3939_v38 = vmul.f32 %v3938_v40, %v7020_v12  ;;  %v3940_v5 = vmul.f32 %v3938_v40, %v7024_v26  ;;  %v7258_v12 = vld [vmem:[#allocation7_spill] sm:$0xff]  ;;  %v7259_v26 = vld [vmem:[#allocation9_spill] sm:$0xff] }
 0x53d   :  { %v3941_v52 = vmul.f32 %v7016_v46, %v3938_v40  ;;  %v3942_v19 = vmul.f32 %v7022_v3, %v3938_v40  ;;  %v3943_v54 = vmul.f32 %v3938_v40, %v7036_v6  ;;  %v3944_v43 = vmul.f32 %v3938_v40, %v7041_v56  ;;  %v7260_v46 = vld [vmem:[#allocation12_spill] sm:$0xff] }
 0x53e   :  { %v3959_v16 = vsub.f32 %v5478_v42, %v3957_v8  ;;  %v3945_v61 = vmul.f32 %v7031_v29, %v3938_v40  ;;  %v3946_v58 = vmul.f32 %v7255_v50, %v3938_v40  ;;  %v3947_v39 = vmul.f32 %v3938_v40, %v7256_v14 }
 0x53f   :  { %v3948_v15 = vmul.f32 %v3938_v40, %v7257_v41  ;;  %v3949_v48 = vmul.f32 %v7258_v12, %v3938_v40  ;;  %v3950_v34 = vmul.f32 %v7259_v26, %v3938_v40  ;;  %v3951_v31 = vmul.f32 %v3938_v40, %v7260_v46 }
 0x540   :  { %v3963_v3 = vrot.slane %v3959_v16, %v3962_v49  ;;  %v3953_v6 = vmul.f32 %v7261_v4, %v3938_v40  ;;  %v3954_v56 = vmul.f32 %v7262_v9, %v3938_v40  ;;  %v4097_v42 = vadd.f32 %v4087_v23, %v4072_v45 }
 0x541   :  { %v4099_v29 = vadd.f32 %v4087_v23, %v4074_v13 }
 0x542   :  { %v3977_v21 = vadd.f32 %v3963_v3, %v3952_v7  ;;  %v3964_v33 = vadd.f32 %v3963_v3, %v3939_v38  ;;  %v3965_v35 = vadd.f32 %v3963_v3, %v3940_v5  ;;  %v3966_v57 = vadd.f32 %v3963_v3, %v3941_v52 }
 0x543   :  { %v3967_v36 = vadd.f32 %v3963_v3, %v3942_v19  ;;  %v3968_v18 = vadd.f32 %v3963_v3, %v3943_v54  ;;  %v3969_v2 = vadd.f32 %v3963_v3, %v3944_v43  ;;  %v3970_v0 = vadd.f32 %v3963_v3, %v3945_v61 }
 0x544   :  { %v4117_v44 = vadd.f32 %v4101_v55, %v3977_v21  ;;  %v3971_v53 = vadd.f32 %v3963_v3, %v3946_v58  ;;  %v3972_v1 = vadd.f32 %v3963_v3, %v3947_v39  ;;  %v3973_v30 = vadd.f32 %v3963_v3, %v3948_v15 }
 0x545   :  { %v3974_v59 = vadd.f32 %v3963_v3, %v3949_v48  ;;  %v3975_v49 = vadd.f32 %v3963_v3, %v3950_v34  ;;  %v3976_v40 = vadd.f32 %v3963_v3, %v3951_v31  ;;  %v3978_v45 = vadd.f32 %v3963_v3, %v3953_v6 }
 0x546   :  { %v4133_v37 = vmax.f32 %v4117_v44, 0.0  ;;  %v3979_v13 = vadd.f32 %v3963_v3, %v3954_v56  ;;  %v4104_v62 = vadd.f32 %v4088_v28, %v3964_v33  ;;  %v4105_v23 = vadd.f32 %v4089_v47, %v3965_v35 }
 0x547   :  { %v4106_v60 = vadd.f32 %v4090_v17, %v3966_v57  ;;  %v4107_v7 = vadd.f32 %v4091_v11, %v3967_v36  ;;  %v4108_v8 = vadd.f32 %v4092_v27, %v3968_v18  ;;  %v4109_v38 = vadd.f32 %v4093_v22, %v3969_v2 }
 0x548   :  { %4149 = vst [vmem:[#allocation3 + $0x68] sm:$0xff] %v4133_v37  ;;  %v4110_v5 = vadd.f32 %v4094_v20, %v3970_v0  ;;  %v4111_v52 = vadd.f32 %v4095_v51, %v3971_v53  ;;  %v4112_v19 = vadd.f32 %v4096_v63, %v3972_v1  ;;  %v4113_v55 = vadd.f32 %v4097_v42, %v3973_v30 }
 0x549   :  { %v4114_v54 = vadd.f32 %v4098_v25, %v3974_v59  ;;  %v4115_v43 = vadd.f32 %v4099_v29, %v3975_v49  ;;  %v4116_v16 = vadd.f32 %v4100_v32, %v3976_v40  ;;  %v4118_v61 = vadd.f32 %v4102_v10, %v3978_v45 }
 0x54a   :  { %v4119_v50 = vadd.f32 %v7124_v24, %v3979_v13  ;;  %v4120_v58 = vmax.f32 %v4104_v62, 0.0  ;;  %v4121_v14 = vmax.f32 %v4105_v23, 0.0  ;;  %v4122_v39 = vmax.f32 %v4106_v60, 0.0 }
 0x54b   :  { %v4123_v28 = vmax.f32 %v4107_v7, 0.0  ;;  %v4124_v47 = vmax.f32 %v4108_v8, 0.0  ;;  %v4125_v17 = vmax.f32 %v4109_v38, 0.0  ;;  %v4126_v11 = vmax.f32 %v4110_v5, 0.0 }
 0x54c   :  { %v4127_v27 = vmax.f32 %v4111_v52, 0.0  ;;  %v4128_v22 = vmax.f32 %v4112_v19, 0.0  ;;  %v4129_v20 = vmax.f32 %v4113_v55, 0.0  ;;  %v4130_v51 = vmax.f32 %v4114_v54, 0.0  ;;  %4136 = vst [vmem:[#allocation3] sm:$0xff] %v4120_v58  ;;  %4137 = vst [vmem:[#allocation3 + $0x8] sm:$0xff] %v4121_v14 }
 0x54d   :  { %4138 = vst [vmem:[#allocation3 + $0x10] sm:$0xff] %v4122_v39  ;;  %v4131_v63 = vmax.f32 %v4115_v43, 0.0  ;;  %v4132_v41 = vmax.f32 %v4116_v16, 0.0  ;;  %v4134_v15 = vmax.f32 %v4118_v61, 0.0  ;;  %v4135_v24 = vmax.f32 %v4119_v50, 0.0  ;;  %4139 = vst [vmem:[#allocation3 + $0x18] sm:$0xff] %v4123_v28 }
 0x54e   :  { %4140 = vst [vmem:[#allocation3 + $0x20] sm:$0xff] %v4124_v47  ;;  %4141 = vst [vmem:[#allocation3 + $0x28] sm:$0xff] %v4125_v17 }
 0x54f   :  { %4142 = vst [vmem:[#allocation3 + $0x30] sm:$0xff] %v4126_v11  ;;  %4143 = vst [vmem:[#allocation3 + $0x38] sm:$0xff] %v4127_v27 }
 0x550   :  { %4144 = vst [vmem:[#allocation3 + $0x40] sm:$0xff] %v4128_v22  ;;  %4145 = vst [vmem:[#allocation3 + $0x48] sm:$0xff] %v4129_v20 }
 0x551   :  { %4146 = vst [vmem:[#allocation3 + $0x50] sm:$0xff] %v4130_v51  ;;  %4147 = vst [vmem:[#allocation3 + $0x58] sm:$0xff] %v4131_v63 }
 0x552   :  { %4148 = vst [vmem:[#allocation3 + $0x60] sm:$0xff] %v4132_v41  ;;  %4150 = vst [vmem:[#allocation3 + $0x70] sm:$0xff] %v4134_v15 }
 0x553   :  { %4151 = vst [vmem:[#allocation3 + $0x78] sm:$0xff] %v4135_v24 }
 0x554   :  { %5490 = shalt.err (!%p5487_p4)
}
 0x555   :  { %s5491_s12 = scalar_lea.hbm %s7176_s4, 2048 }
 0x556   :  { %p5492_p5 = scmp.ne.s32.totalorder %s7176_s4, %s5491_s12  ;;  %p5495_p6 = scmp.lt.u32.totalorder %s5491_s12, %s7176_s4 }
 0x558   :  { %p5497_p7 = pnand %p5495_p6, %p5492_p5 }
 0x55a   :  { %5500 = shalt.err (!%p5497_p7)
}
 0x55b   :  { %s5506_s1 = smov 128   ;;  %s5507_s17 = smov 8  }
 0x55c   :  { %4163 = dma.vmem_to_hbm [thread:$0]  %s4158_s8, 2048, %s7176_s4, [#allocation4], %s5506_s1, %s5506_s1, %s5507_s17  }
 0x55d   :  { %5501 = dma.done.wait [#allocation4], 2048  }
 0x55e   :  { %5502 = vsyncadd [#allocation4], 4294965248 }
 0x55f   :  { %4167 = vsyncpa [#allocation4], 1 }

</bundles_post_ra>
